<compile_context>
chip_gen: v7x
topology: tpu7x:2x2x1
jax: 0.10.0
libtpu: 0.0.40
codegen_flags: <defaults>
</compile_context>

<pallas_src>
import jax
import jax.numpy as jnp
from jax.experimental import pallas as pl
from jax.experimental.pallas import tpu as pltpu


def _round_up(n, m):
    return ((n + m - 1) // m) * m


def a2c_critic_kernel(x_ref,
                      w1_ref, b1_ref,   # shared: state  -> hid1
                      w2_ref, b2_ref,   # shared: hid1   -> hid2
                      w3_ref, b3_ref,   # shared: hid2   -> hid2
                      w4_ref, b4_ref,   # critic: hid2   -> hid2
                      w5_ref, b5_ref,   # critic: hid2   -> 1
                      o_ref):
    def linear_tanh(h_bf16, w_ref, b_ref):
        # bf16 MXU matmul, f32 accumulate, f32 bias-add + tanh (EUP).
        y = jnp.dot(h_bf16, w_ref[...], preferred_element_type=jnp.float32)
        return jnp.tanh(y + b_ref[...])

    h = linear_tanh(x_ref[...].astype(jnp.bfloat16), w1_ref, b1_ref)   # [tB, hid1]
    h = linear_tanh(h.astype(jnp.bfloat16), w2_ref, b2_ref)            # [tB, hid2]
    h = linear_tanh(h.astype(jnp.bfloat16), w3_ref, b3_ref)            # [tB, hid2]
    h = linear_tanh(h.astype(jnp.bfloat16), w4_ref, b4_ref)            # [tB, hid2]
    # Final value head: Linear(hid2, 1), no activation.
    v = jnp.dot(h.astype(jnp.bfloat16), w5_ref[...],
                preferred_element_type=jnp.float32) + b5_ref[...]
    o_ref[...] = v.astype(o_ref.dtype)


def a2c_critic_forward(x, params, *, batch_tile=128):
    """x: [B, state_size] float32. params: 5 (W bf16 [in,out], b f32 [1,out]) pairs."""
    (w1, b1, w2, b2, w3, b3, w4, b4, w5, b5) = params
    B, S = x.shape
    out_dim = w5.shape[1]

    # Batch tiling: tile is a multiple of 8 (sublane), batch padded to the tile.
    tile_b = min(batch_tile, _round_up(B, 8))
    B_pad = _round_up(B, tile_b)
    if B_pad != B:
        x = jnp.pad(x, ((0, B_pad - B), (0, 0)))
    grid = (B_pad // tile_b,)

    def resident(shape):
        # Constant block index -> array is DMA'd once and stays VMEM-resident.
        return pl.BlockSpec(shape, lambda i: (0, 0))

    in_specs = [pl.BlockSpec((tile_b, S), lambda i: (i, 0))]
    for w, b in ((w1, b1), (w2, b2), (w3, b3), (w4, b4), (w5, b5)):
        in_specs.append(resident(w.shape))
        in_specs.append(resident(b.shape))
    out_specs = pl.BlockSpec((tile_b, out_dim), lambda i: (i, 0))

    # Advisory cost estimate for XLA's scheduler.
    dims = [w1.shape, w2.shape, w3.shape, w4.shape, w5.shape]
    flops = 2 * B_pad * sum(di * do for di, do in dims)
    transcendentals = B_pad * (w1.shape[1] + w2.shape[1] + w3.shape[1] + w4.shape[1])
    bytes_accessed = (x.size * 4 + B_pad * out_dim * 4
                      + sum(di * do * 2 for di, do in dims)      # bf16 weights
                      + sum(do * 4 for _, do in dims))           # f32 biases
    cost = pl.CostEstimate(flops=int(flops),
                           transcendentals=int(transcendentals),
                           bytes_accessed=int(bytes_accessed))

    out = pl.pallas_call(
        a2c_critic_kernel,
        out_shape=jax.ShapeDtypeStruct((B_pad, out_dim), jnp.float32),
        grid=grid,
        in_specs=in_specs,
        out_specs=out_specs,
        compiler_params=pltpu.CompilerParams(
            dimension_semantics=("parallel",)),
        cost_estimate=cost,
    )(x, w1, b1, w2, b2, w3, b3, w4, b4, w5, b5)

    return out[:B] if B_pad != B else out


def init_linear_params(key, fan_in, fan_out):
    """PyTorch nn.Linear init: U(-1/sqrt(fan_in), 1/sqrt(fan_in)).

    Returns W as bf16 [fan_in, fan_out] (pre-transposed for x @ W) and b as f32 [1, fan_out].
    """
    kw, kb = jax.random.split(key)
    bound = 1.0 / jnp.sqrt(jnp.float32(fan_in))
    w = jax.random.uniform(kw, (fan_in, fan_out), jnp.float32, -bound, bound)
    b = jax.random.uniform(kb, (1, fan_out), jnp.float32, -bound, bound)
    return w.astype(jnp.bfloat16), b


def _ref_forward(x, params):
    """Pure-JAX reference using the same bf16-in / f32-accumulate recipe."""
    (w1, b1, w2, b2, w3, b3, w4, b4, w5, b5) = params

    def lt(h, w, b):
        return jnp.tanh(
            jnp.dot(h.astype(jnp.bfloat16), w, preferred_element_type=jnp.float32) + b)

    h = lt(x, w1, b1)
    h = lt(h, w2, b2)
    h = lt(h, w3, b3)
    h = lt(h, w4, b4)
    return jnp.dot(h.astype(jnp.bfloat16), w5,
                   preferred_element_type=jnp.float32) + b5


if __name__ == "__main__":
    # Module defaults: hidsize1=512, hidsize2=256; small state_size, batched rows
    # (B=256 -> two 128-row grid steps, weights VMEM-resident across both).
    B, state_size, hid1, hid2 = 256, 32, 512, 256

    key = jax.random.PRNGKey(0)
    kx, k1, k2, k3, k4, k5 = jax.random.split(key, 6)

    x = jax.random.normal(kx, (B, state_size), jnp.float32)
    w1, b1 = init_linear_params(k1, state_size, hid1)   # shared layer 1
    w2, b2 = init_linear_params(k2, hid1, hid2)         # shared layer 2
    w3, b3 = init_linear_params(k3, hid2, hid2)         # shared layer 3
    w4, b4 = init_linear_params(k4, hid2, hid2)         # critic hidden
    w5, b5 = init_linear_params(k5, hid2, 1)            # critic value head
    params = (w1, b1, w2, b2, w3, b3, w4, b4, w5, b5)

    out = a2c_critic_forward(x, params)
    out = jax.block_until_ready(out)

    ref = _ref_forward(x, params)
    assert out.shape == (B, 1)
    assert jnp.allclose(out, ref, atol=5e-3, rtol=5e-3), (
        float(jnp.max(jnp.abs(out - ref))))

    # TODO(synk): torch.save/torch.load state-dict persistence (save/_load/load)
    # is host-side file I/O with no Pallas equivalent; omitted.
    print("KERNEL_OK")
</pallas_src>

<mosaic_0001>
module attributes {stable_mosaic.version = 11 : i64} {
  func.func @a2c_critic_kernel(%arg0: i32, %arg1: memref<128x32xf32, #tpu.memory_space<vmem>>, %arg2: memref<32x512xbf16, #tpu.memory_space<vmem>>, %arg3: memref<1x512xf32, #tpu.memory_space<vmem>>, %arg4: memref<512x256xbf16, #tpu.memory_space<vmem>>, %arg5: memref<1x256xf32, #tpu.memory_space<vmem>>, %arg6: memref<256x256xbf16, #tpu.memory_space<vmem>>, %arg7: memref<1x256xf32, #tpu.memory_space<vmem>>, %arg8: memref<256x256xbf16, #tpu.memory_space<vmem>>, %arg9: memref<1x256xf32, #tpu.memory_space<vmem>>, %arg10: memref<256x1xbf16, #tpu.memory_space<vmem>>, %arg11: memref<1x1xf32, #tpu.memory_space<vmem>>, %arg12: memref<128x1xf32, #tpu.memory_space<vmem>>) attributes {dimension_semantics = [#tpu.dimension_semantics<parallel>], iteration_bounds = array<i64: 2>, scalar_prefetch = 0 : i64, scratch_operands = 0 : i64, tpu.core_type = #tpu.core_type<tc>, window_params = [{transform_indices = @transform_0, window_bounds = array<i64: 128, 32>}, {pipeline_mode = #tpu.pipeline_mode<synchronous>, transform_indices = @transform_1, window_bounds = array<i64: 32, 512>}, {pipeline_mode = #tpu.pipeline_mode<synchronous>, transform_indices = @transform_2, window_bounds = array<i64: 1, 512>}, {pipeline_mode = #tpu.pipeline_mode<synchronous>, transform_indices = @transform_3, window_bounds = array<i64: 512, 256>}, {pipeline_mode = #tpu.pipeline_mode<synchronous>, transform_indices = @transform_4, window_bounds = array<i64: 1, 256>}, {pipeline_mode = #tpu.pipeline_mode<synchronous>, transform_indices = @transform_5, window_bounds = array<i64: 256, 256>}, {pipeline_mode = #tpu.pipeline_mode<synchronous>, transform_indices = @transform_6, window_bounds = array<i64: 1, 256>}, {pipeline_mode = #tpu.pipeline_mode<synchronous>, transform_indices = @transform_7, window_bounds = array<i64: 256, 256>}, {pipeline_mode = #tpu.pipeline_mode<synchronous>, transform_indices = @transform_8, window_bounds = array<i64: 1, 256>}, {pipeline_mode = #tpu.pipeline_mode<synchronous>, transform_indices = @transform_9, window_bounds = array<i64: 256, 1>}, {pipeline_mode = #tpu.pipeline_mode<synchronous>, transform_indices = @transform_10, window_bounds = array<i64: 1, 1>}, {transform_indices = @transform_11, window_bounds = array<i64: 128, 1>}]} {
    %c0 = arith.constant 0 : index
    %c0_0 = arith.constant 0 : index
    %0 = vector.load %arg1[%c0, %c0_0] : memref<128x32xf32, #tpu.memory_space<vmem>>, vector<128x32xf32>
    %1 = arith.truncf %0 : vector<128x32xf32> to vector<128x32xbf16>
    %c0_1 = arith.constant 0 : index
    %c0_2 = arith.constant 0 : index
    %2 = vector.load %arg2[%c0_1, %c0_2] : memref<32x512xbf16, #tpu.memory_space<vmem>>, vector<32x512xbf16>
    %cst = arith.constant dense<0.000000e+00> : vector<128x512xf32>
    %3 = tpu.matmul %1, %2, %cst {dimension_numbers = #tpu.dot_dimension_numbers<[1], [0], [0], [1], [0, 0, 1, 1], [], []>} : vector<128x32xbf16>, vector<32x512xbf16>, vector<128x512xf32> -> vector<128x512xf32>
    %c0_3 = arith.constant 0 : index
    %c0_4 = arith.constant 0 : index
    %4 = vector.load %arg3[%c0_3, %c0_4] : memref<1x512xf32, #tpu.memory_space<vmem>>, vector<1x512xf32>
    %5 = vector.broadcast %4 : vector<1x512xf32> to vector<128x512xf32>
    %6 = arith.addf %3, %5 : vector<128x512xf32>
    %7 = math.tanh %6 : vector<128x512xf32>
    %8 = arith.truncf %7 : vector<128x512xf32> to vector<128x512xbf16>
    %c0_5 = arith.constant 0 : index
    %c0_6 = arith.constant 0 : index
    %9 = vector.load %arg4[%c0_5, %c0_6] : memref<512x256xbf16, #tpu.memory_space<vmem>>, vector<512x256xbf16>
    %cst_7 = arith.constant dense<0.000000e+00> : vector<128x256xf32>
    %10 = tpu.matmul %8, %9, %cst_7 {dimension_numbers = #tpu.dot_dimension_numbers<[1], [0], [0], [1], [0, 0, 1, 1], [], []>} : vector<128x512xbf16>, vector<512x256xbf16>, vector<128x256xf32> -> vector<128x256xf32>
    %c0_8 = arith.constant 0 : index
    %c0_9 = arith.constant 0 : index
    %11 = vector.load %arg5[%c0_8, %c0_9] : memref<1x256xf32, #tpu.memory_space<vmem>>, vector<1x256xf32>
    %12 = vector.broadcast %11 : vector<1x256xf32> to vector<128x256xf32>
    %13 = arith.addf %10, %12 : vector<128x256xf32>
    %14 = math.tanh %13 : vector<128x256xf32>
    %15 = arith.truncf %14 : vector<128x256xf32> to vector<128x256xbf16>
    %c0_10 = arith.constant 0 : index
    %c0_11 = arith.constant 0 : index
    %16 = vector.load %arg6[%c0_10, %c0_11] : memref<256x256xbf16, #tpu.memory_space<vmem>>, vector<256x256xbf16>
    %cst_12 = arith.constant dense<0.000000e+00> : vector<128x256xf32>
    %17 = tpu.matmul %15, %16, %cst_12 {dimension_numbers = #tpu.dot_dimension_numbers<[1], [0], [0], [1], [0, 0, 1, 1], [], []>} : vector<128x256xbf16>, vector<256x256xbf16>, vector<128x256xf32> -> vector<128x256xf32>
    %c0_13 = arith.constant 0 : index
    %c0_14 = arith.constant 0 : index
    %18 = vector.load %arg7[%c0_13, %c0_14] : memref<1x256xf32, #tpu.memory_space<vmem>>, vector<1x256xf32>
    %19 = vector.broadcast %18 : vector<1x256xf32> to vector<128x256xf32>
    %20 = arith.addf %17, %19 : vector<128x256xf32>
    %21 = math.tanh %20 : vector<128x256xf32>
    %22 = arith.truncf %21 : vector<128x256xf32> to vector<128x256xbf16>
    %c0_15 = arith.constant 0 : index
    %c0_16 = arith.constant 0 : index
    %23 = vector.load %arg8[%c0_15, %c0_16] : memref<256x256xbf16, #tpu.memory_space<vmem>>, vector<256x256xbf16>
    %cst_17 = arith.constant dense<0.000000e+00> : vector<128x256xf32>
    %24 = tpu.matmul %22, %23, %cst_17 {dimension_numbers = #tpu.dot_dimension_numbers<[1], [0], [0], [1], [0, 0, 1, 1], [], []>} : vector<128x256xbf16>, vector<256x256xbf16>, vector<128x256xf32> -> vector<128x256xf32>
    %c0_18 = arith.constant 0 : index
    %c0_19 = arith.constant 0 : index
    %25 = vector.load %arg9[%c0_18, %c0_19] : memref<1x256xf32, #tpu.memory_space<vmem>>, vector<1x256xf32>
    %26 = vector.broadcast %25 : vector<1x256xf32> to vector<128x256xf32>
    %27 = arith.addf %24, %26 : vector<128x256xf32>
    %28 = math.tanh %27 : vector<128x256xf32>
    %29 = arith.truncf %28 : vector<128x256xf32> to vector<128x256xbf16>
    %c0_20 = arith.constant 0 : index
    %c0_21 = arith.constant 0 : index
    %30 = vector.load %arg10[%c0_20, %c0_21] : memref<256x1xbf16, #tpu.memory_space<vmem>>, vector<256x1xbf16>
    %cst_22 = arith.constant dense<0.000000e+00> : vector<128x1xf32>
    %31 = tpu.matmul %29, %30, %cst_22 {dimension_numbers = #tpu.dot_dimension_numbers<[1], [0], [0], [1], [0, 0, 1, 1], [], []>} : vector<128x256xbf16>, vector<256x1xbf16>, vector<128x1xf32> -> vector<128x1xf32>
    %c0_23 = arith.constant 0 : index
    %c0_24 = arith.constant 0 : index
    %32 = vector.load %arg11[%c0_23, %c0_24] : memref<1x1xf32, #tpu.memory_space<vmem>>, vector<1x1xf32>
    %33 = vector.broadcast %32 : vector<1x1xf32> to vector<128x1xf32>
    %34 = arith.addf %31, %33 : vector<128x1xf32>
    %c0_25 = arith.constant 0 : index
    %c0_26 = arith.constant 0 : index
    %35 = vector.load %arg12[%c0_25, %c0_26] : memref<128x1xf32, #tpu.memory_space<vmem>>, vector<128x1xf32>
    tpu.vector_store %arg12[%c0_25, %c0_26], %34 {strides = array<i32>} : memref<128x1xf32, #tpu.memory_space<vmem>>, vector<128x1xf32>,
    return
  }
  func.func @transform_0(%arg0: i32) -> (i32, i32) {
    %c0_i32 = arith.constant 0 : i32
    %c0_i32_0 = arith.constant 0 : i32
    return %arg0, %c0_i32 : i32, i32
  }
  func.func @transform_1(%arg0: i32) -> (i32, i32) {
    %c0_i32 = arith.constant 0 : i32
    %c0_i32_0 = arith.constant 0 : i32
    %c0_i32_1 = arith.constant 0 : i32
    return %c0_i32, %c0_i32_0 : i32, i32
  }
  func.func @transform_2(%arg0: i32) -> (i32, i32) {
    %c0_i32 = arith.constant 0 : i32
    %c0_i32_0 = arith.constant 0 : i32
    %c0_i32_1 = arith.constant 0 : i32
    return %c0_i32, %c0_i32_0 : i32, i32
  }
  func.func @transform_3(%arg0: i32) -> (i32, i32) {
    %c0_i32 = arith.constant 0 : i32
    %c0_i32_0 = arith.constant 0 : i32
    %c0_i32_1 = arith.constant 0 : i32
    return %c0_i32, %c0_i32_0 : i32, i32
  }
  func.func @transform_4(%arg0: i32) -> (i32, i32) {
    %c0_i32 = arith.constant 0 : i32
    %c0_i32_0 = arith.constant 0 : i32
    %c0_i32_1 = arith.constant 0 : i32
    return %c0_i32, %c0_i32_0 : i32, i32
  }
  func.func @transform_5(%arg0: i32) -> (i32, i32) {
    %c0_i32 = arith.constant 0 : i32
    %c0_i32_0 = arith.constant 0 : i32
    %c0_i32_1 = arith.constant 0 : i32
    return %c0_i32, %c0_i32_0 : i32, i32
  }
  func.func @transform_6(%arg0: i32) -> (i32, i32) {
    %c0_i32 = arith.constant 0 : i32
    %c0_i32_0 = arith.constant 0 : i32
    %c0_i32_1 = arith.constant 0 : i32
    return %c0_i32, %c0_i32_0 : i32, i32
  }
  func.func @transform_7(%arg0: i32) -> (i32, i32) {
    %c0_i32 = arith.constant 0 : i32
    %c0_i32_0 = arith.constant 0 : i32
    %c0_i32_1 = arith.constant 0 : i32
    return %c0_i32, %c0_i32_0 : i32, i32
  }
  func.func @transform_8(%arg0: i32) -> (i32, i32) {
    %c0_i32 = arith.constant 0 : i32
    %c0_i32_0 = arith.constant 0 : i32
    %c0_i32_1 = arith.constant 0 : i32
    return %c0_i32, %c0_i32_0 : i32, i32
  }
  func.func @transform_9(%arg0: i32) -> (i32, i32) {
    %c0_i32 = arith.constant 0 : i32
    %c0_i32_0 = arith.constant 0 : i32
    %c0_i32_1 = arith.constant 0 : i32
    return %c0_i32, %c0_i32_0 : i32, i32
  }
  func.func @transform_10(%arg0: i32) -> (i32, i32) {
    %c0_i32 = arith.constant 0 : i32
    %c0_i32_0 = arith.constant 0 : i32
    %c0_i32_1 = arith.constant 0 : i32
    return %c0_i32, %c0_i32_0 : i32, i32
  }
  func.func @transform_11(%arg0: i32) -> (i32, i32) {
    %c0_i32 = arith.constant 0 : i32
    %c0_i32_0 = arith.constant 0 : i32
    return %arg0, %c0_i32 : i32, i32
  }
}

</mosaic_0001>

<bundles_post_ra>
// kernel: tpu_custom_call.1
= control target key start
LH: loop header
LB: loop body
LE: loop exit
PB: predicated region body
PF: predicated region fallthrough
CT: control target
= control target key end

     0   :  { %s4313_s0 = inlined_call_operand.vmem [shape: f32[256,32], index: 0, kind: input, shape index: {}]   ;;  %s4314_s1 = inlined_call_operand.vmem [shape: bf16[32,512], index: 1, kind: input, shape index: {}]   ;;  %s4315_s2 = inlined_call_operand.vmem [shape: f32[1,512], index: 2, kind: input, shape index: {}]   ;;  %s4316_s3 = inlined_call_operand.hbm [shape: bf16[512,256], index: 3, kind: input, shape index: {}]   ;;  %s4317_s4 = inlined_call_operand.vmem [shape: f32[1,256], index: 4, kind: input, shape index: {}]   ;;  %s4318_s5 = inlined_call_operand.vmem [shape: bf16[256,256], index: 5, kind: input, shape index: {}]   ;;  %s4319_s6 = inlined_call_operand.vmem [shape: f32[1,256], index: 6, kind: input, shape index: {}]   ;;  %s4320_s7 = inlined_call_operand.hbm [shape: bf16[256,256], index: 7, kind: input, shape index: {}]   ;;  %s4321_s8 = inlined_call_operand.vmem [shape: f32[1,256], index: 8, kind: input, shape index: {}]   ;;  %s4322_s9 = inlined_call_operand.vmem [shape: bf16[256,1], index: 9, kind: input, shape index: {}]   ;;  %s4323_s10 = inlined_call_operand.<no memory space> [shape: f32[1,1], index: 10, kind: input, shape index: {}]   ;;  %s4324_s11 = inlined_call_operand.vmem [shape: f32[256,1], index: 11, kind: output, shape index: {}]  }
   0x1   :  { %v16_v0 = vstv %s4323_s10 }
   0x2   :  { %17 = vst [vmem:[#allocation2] sm:$0x1] %v16_v0 }
   0x3   :  { %18 = vsyncpa [#allocation4], 0 }
   0x4   :  { %19 = vsyncpa [#allocation6], 0  ;;  %s3631_s19 = smov 0  }
   0x5 LB: > { %s2591_s20 = sadd.s32 4294967295, %s3561_s19   ;;  %p2593_p0 = scmp.ge.s32.totalorder %s3561_s19, 1  ;;  %s3561_s19 = sphi %s3631_s19, %s25_s19  }
   0x6   : > { %p292_p1 = scmp.lt.s32.totalorder %s3561_s19, 3  ;;  %s3563_s21 = smov [#allocation3]  }
   0x7   : > { %s310_s22 = sshll.u32 %s3563_s21, 4  ;;  %p3645_p3 = scmp.eq.s32.totalorder %s2591_s20, 0  ;;  %s311_s22 = int_to_ptr.vmem [resolvable:$true] %s310_s22 }
   0x8   : > { %p3639_p2 = pnand %p2593_p0, %p292_p1  ;;  %s3564_s24 = smov [#allocation5]  }
   0x9   : > { %s4329_s23 = scalar_select %p3645_p3, 1, 0 }
   0xa   : > { %s4328_s10 = scalar_select %p3639_p2, 1, 0 }
   0xb   : > { %p2927_p4 = pneg %p3639_p2  ;;  %s332_s25 = sshll.u32 %s3564_s24, 4  ;;  %s3657_s25 = int_to_ptr.vmem [resolvable:$true] %s332_s25 }
   0xc   : > { %s3491_s29 = scalar_lea.hbm %s4316_s3, 8192 }
   0xd   : > { %p3653_p5 = pnand %p3645_p3, %p2927_p4  ;;  %p3492_p6 = scmp.ne.s32.totalorder %s4316_s3, %s3491_s29 }
   0xe   : > { %p3498_p10 = scmp.lt.u32.totalorder %s3491_s29, %s4316_s3 }
   0xf   : > { %p3493_p7 = pneg %p3653_p5 }
  0x11   : > { %p3494_p8 = pnand %p3493_p7, %p3492_p6 }
  0x13   : > { %p3495_p9 = pneg %p3494_p8 }
  0x15   : > { %p3500_p11 = pnand %p3498_p10, %p3495_p9 }
  0x17   : > { %3503 = shalt.err (!%p3500_p11)
}
  0x18   : > { %s3504_s15 = scalar_lea.vmem %s311_s22, 8192  ;;  %p3512_p1 = scmp.lt.s32.totalorder %s311_s22, %s311_s22 }
  0x19   : > { %p3505_p12 = scmp.ne.s32.totalorder %s311_s22, %s3504_s15  ;;  %p3513_p4 = scmp.lt.s32.totalorder %s3504_s15, %s3504_s15 }
  0x1b   : > { %p3507_p13 = pnand %p3505_p12, %p3493_p7  ;;  %p3514_p3 = por %p3513_p4, %p3512_p1 }
  0x1d   : > { %p3508_p0 = pneg %p3507_p13 }
  0x1f   : > { %p3515_p2 = pnand %p3514_p3, %p3508_p0 }
  0x21   : > { %3518 = shalt.err (!%p3515_p2)
}
  0x22   : > { %s3565_s16 = smov 128   ;;  %s3566_s17 = smov 8  }
  0x23   : > { %2930 = dma.hbm_to_vmem [thread:$0]  (!%p3653_p5), %s4316_s3, 8192, %s311_s22, [#allocation4], %s3565_s16, %s3565_s16, %s3566_s17  }
  0x24   : > { %s3519_s28 = scalar_lea.hbm %s4320_s7, 4096 }
  0x25   : > { %p3520_p6 = scmp.ne.s32.totalorder %s4320_s7, %s3519_s28  ;;  %p3526_p8 = scmp.lt.u32.totalorder %s3519_s28, %s4320_s7 }
  0x27   : > { %p3522_p2 = pnand %p3520_p6, %p3493_p7 }
  0x29   : > { %p3523_p3 = pneg %p3522_p2 }
  0x2b   : > { %p3528_p9 = pnand %p3526_p8, %p3523_p3 }
  0x2d   : > { %3531 = shalt.err (!%p3528_p9)
}
  0x2e   : > { %s3532_s22 = scalar_lea.vmem %s3657_s25, 4096  ;;  %p3540_p13 = scmp.lt.s32.totalorder %s3657_s25, %s3657_s25 }
  0x2f   : > { %p3533_p10 = scmp.ne.s32.totalorder %s3657_s25, %s3532_s22  ;;  %p3541_p0 = scmp.lt.s32.totalorder %s3532_s22, %s3532_s22 }
  0x31   : > { %p3535_p11 = pnand %p3533_p10, %p3493_p7  ;;  %p3542_p1 = por %p3541_p0, %p3540_p13 }
  0x33   : > { %p3536_p12 = pneg %p3535_p11 }
  0x35   : > { %p3543_p4 = pnand %p3542_p1, %p3536_p12 }
  0x37   : > { %3546 = shalt.err (!%p3543_p4)
}
  0x38   : > { %2933 = dma.hbm_to_vmem [thread:$0]  (!%p3653_p5), %s4320_s7, 4096, %s3657_s25, [#allocation6], %s3565_s16, %s3565_s16, %s3566_s17  }
  0x39   : > { %p4331_p6 = scmp.ne.s32.totalorder %s4328_s10, 0 }
  0x3a   : > { %p4332_p2 = scmp.ne.s32.totalorder (!%p4331_p6), %s4329_s23, 0 }
  0x3b   : > { %366 = sbr.rel (%p4331_p6) target bundleno = 1343 (0x53f), region = 64 }
  0x42   : > { %3552 = dma.done.wait (%p4332_p2), [#allocation4], 8192  }
  0x43   : > { %3554 = vsyncadd (%p4332_p2), [#allocation4], 4294959104 }
  0x44   : > { %3556 = dma.done.wait (%p4332_p2), [#allocation6], 4096  }
  0x45   : > { %3558 = vsyncadd (%p4332_p2), [#allocation6], 4294963200  ;;  %s2600_s26 = sshll.u32 %s2591_s20, 4  ;;  %v3567_v1 = vmov 0   ;;  %v2951_v2 = vld [vmem:[%s4314_s1 + $0x4] ss:$16 sps:$4 sm:$0xff]  }
  0x46   : > { %574 = vmatprep.mubr.bf16.mxu0 %v3567_v1  ;;  %p411_p5 = scmp.lt.s32.totalorder %s2600_s26, 31  ;;  %687 = vmatprep.mubr.bf16.mxu1 %v3567_v1  ;;  %v2953_v3 = vld [vmem:[%s4314_s1] ss:$16 sps:$4 sm:$0xff]   ;;  %v2954_v4 = vld [vmem:[%s4314_s1 + $0x24] ss:$16 sps:$4 sm:$0xff]   ;;  %vm517_vm0 = vcmask 261120  }
  0x47   : > { %542 = vmatprep.subr.bf16.mxu0 %v2951_v2  ;;  %v2956_v5 = vld [vmem:[%s4314_s1 + $0x20] ss:$16 sps:$4 sm:$0xff]   ;;  %v2957_v9 = vld [vmem:[%s4314_s1 + $0xc] ss:$16 sps:$4 sm:$0xff]   ;;  %v2959_v10 = vld [vmem:[%s4314_s1 + $0x8] ss:$16 sps:$4 sm:$0xff]  }
  0x48   : > { %s4334_s26 = smov (!%p411_p5, %s2600_s26), 31  ;;  %543 = vmatpush1.bf16.msra.mxu0 %v2953_v3  ;;  %655 = vmatprep.subr.bf16.mxu1 %v2957_v9  ;;  %v2960_v13 = vld [vmem:[%s4314_s1 + $0x2c] ss:$16 sps:$4 sm:$0xff]   ;;  %v2962_v14 = vld [vmem:[%s4314_s1 + $0x28] ss:$16 sps:$4 sm:$0xff]   ;;  %vm2496_vm1 = vcmask 7168  }
  0x49   : > { %s2601_s10 = sshll.u32 %s4334_s26, 3  ;;  %544 = vmatprep.subr.bf16.mxu0 %v2954_v4  ;;  %656 = vmatpush1.bf16.msra.mxu1 %v2959_v10  ;;  %v2963_v15 = vld [vmem:[#allocation3] ss:$8 sps:$4 sm:$0xff]   ;;  %v2965_v16 = vld [vmem:[#allocation3 + $0x4] ss:$8 sps:$4 sm:$0xff]  }
  0x4a   : > { %s3731_s20 = scalar_lea.vmem %s4313_s0, %s2601_s10  ;;  %657 = vmatprep.subr.bf16.mxu1 %v2960_v13  ;;  %v2968_v17 = vld [vmem:[#allocation3 + $0x14] ss:$8 sps:$4 sm:$0xff]   ;;  %v2966_v19 = vld [vmem:[#allocation3 + $0x10] ss:$8 sps:$4 sm:$0xff]   ;;  %v2971_v20 = vld [vmem:[#allocation3 + $0x24] ss:$8 sps:$4 sm:$0xff]   ;;  %s4260_s21 = scalar_lea.vmem %s4324_s11, %s2601_s10 }
  0x4b   : > { %v423_v6 = vld [vmem:[%s3731_s20] sm:$0xff]  ;;  %v424_v7 = vld [vmem:[%s3731_s20 + $0x8] sm:$0xff]  ;;  %v425_v11 = vld [vmem:[%s3731_s20 + $0x10] sm:$0xff] }
  0x4c   : > { %v439_v8 = vpack.c.bf16 %v424_v7, %v423_v6  ;;  %545 = vmatpush1.bf16.msra.mxu0 %v2956_v5  ;;  %v426_v12 = vld [vmem:[%s3731_s20 + $0x18] sm:$0xff]  ;;  %v427_v21 = vld [vmem:[%s3731_s20 + $0x20] sm:$0xff]  ;;  %v428_v22 = vld [vmem:[%s3731_s20 + $0x28] sm:$0xff] }
  0x4d   : > { %1260 = vmatprep.subr.bf16.mxu0 %v2965_v16  ;;  %v440_v18 = vpack.c.bf16 %v426_v12, %v425_v11  ;;  %658 = vmatpush1.bf16.msra.mxu1 %v2962_v14  ;;  %v2969_v23 = vld [vmem:[#allocation3 + $0x20] ss:$8 sps:$4 sm:$0xff]   ;;  %v2974_v24 = vld [vmem:[#allocation3 + $0x34] ss:$8 sps:$4 sm:$0xff]   ;;  %v441_v25 = vpack.c.bf16 %v428_v22, %v427_v21  ;;  %v2972_v26 = vld [vmem:[#allocation3 + $0x30] ss:$8 sps:$4 sm:$0xff]  }
  0x4e   : > { %v2977_v27 = vld [vmem:[#allocation3 + $0x44] ss:$8 sps:$4 sm:$0xff]   ;;  %v430_v29 = vld [vmem:[%s3731_s20 + $0x38] sm:$0xff]  ;;  %v2975_v30 = vld [vmem:[#allocation3 + $0x40] ss:$8 sps:$4 sm:$0xff]  }
  0x4f   : > { %2612 = vmatmul.mubr.msk.bf16.vlgmr.msra.gmra.mrb[0].mxu0 %vm517_vm0, %v439_v8  ;;  %v429_v28 = vld [vmem:[%s3731_s20 + $0x30] sm:$0xff]  ;;  %v431_v35 = vld [vmem:[%s3731_s20 + $0x40] sm:$0xff]  ;;  %v432_v36 = vld [vmem:[%s3731_s20 + $0x48] sm:$0xff] }
  0x50   : > { %584 = vmatprep.mubr.bf16.mxu0 %v3567_v1  ;;  %1261 = vmatpush1.bf16.msra.mxu0 %v2963_v15  ;;  %v2980_v31 = vld [vmem:[#allocation3 + $0x54] ss:$8 sps:$4 sm:$0xff]   ;;  %v442_v32 = vpack.c.bf16 %v430_v29, %v429_v28  ;;  %v2978_v33 = vld [vmem:[#allocation3 + $0x50] ss:$8 sps:$4 sm:$0xff]   ;;  %v2983_v34 = vld [vmem:[#allocation3 + $0x64] ss:$8 sps:$4 sm:$0xff]   ;;  %v443_v39 = vpack.c.bf16 %v432_v36, %v431_v35 }
  0x51   : > { %1262 = vmatprep.subr.bf16.mxu0 %v2968_v17  ;;  %2620 = vmatmul.mubr.msk.bf16.vlgmr.msra.gmra.mrb[0].mxu1 %vm517_vm0, %v439_v8  ;;  %v2981_v37 = vld [vmem:[#allocation3 + $0x60] ss:$8 sps:$4 sm:$0xff]   ;;  %v2986_v38 = vld [vmem:[#allocation3 + $0x74] ss:$8 sps:$4 sm:$0xff]   ;;  %v2984_v40 = vld [vmem:[#allocation3 + $0x70] ss:$8 sps:$4 sm:$0xff]  }
  0x52   : > { %697 = vmatprep.mubr.bf16.mxu1 %v3567_v1  ;;  %v2989_v41 = vld [vmem:[#allocation3 + $0x84] ss:$8 sps:$4 sm:$0xff]   ;;  %v434_v43 = vld [vmem:[%s3731_s20 + $0x58] sm:$0xff]  ;;  %v2987_v44 = vld [vmem:[#allocation3 + $0x80] ss:$8 sps:$4 sm:$0xff]  }
  0x53   : > { %v433_v42 = vld [vmem:[%s3731_s20 + $0x50] sm:$0xff]  ;;  %v435_v49 = vld [vmem:[%s3731_s20 + $0x60] sm:$0xff]  ;;  %v436_v50 = vld [vmem:[%s3731_s20 + $0x68] sm:$0xff] }
  0x54   : > { %1263 = vmatpush1.bf16.msra.mxu0 %v2966_v19  ;;  %v2992_v45 = vld [vmem:[#allocation3 + $0x94] ss:$8 sps:$4 sm:$0xff]   ;;  %v444_v46 = vpack.c.bf16 %v434_v43, %v433_v42  ;;  %v2990_v47 = vld [vmem:[#allocation3 + $0x90] ss:$8 sps:$4 sm:$0xff]   ;;  %v2995_v48 = vld [vmem:[#allocation3 + $0xa4] ss:$8 sps:$4 sm:$0xff]   ;;  %v445_v53 = vpack.c.bf16 %v436_v50, %v435_v49 }
  0x55   : > { %1264 = vmatprep.subr.bf16.mxu0 %v2971_v20  ;;  %v2993_v51 = vld [vmem:[#allocation3 + $0xa0] ss:$8 sps:$4 sm:$0xff]   ;;  %v2998_v52 = vld [vmem:[#allocation3 + $0xb4] ss:$8 sps:$4 sm:$0xff]   ;;  %v2996_v54 = vld [vmem:[#allocation3 + $0xb0] ss:$8 sps:$4 sm:$0xff]  }
  0x56   : > { %v437_v55 = vld [vmem:[%s3731_s20 + $0x70] sm:$0xff]  ;;  %v438_v56 = vld [vmem:[%s3731_s20 + $0x78] sm:$0xff]  ;;  %v2999_v59 = vld [vmem:[#allocation3 + $0xc0] ss:$8 sps:$4 sm:$0xff]  }
  0x57   : > { %2613 = vmatmul.mubr.msk.bf16.gmra.mrb[4].mxu0 %vm517_vm0, %v440_v18  ;;  %v446_v57 = vpack.c.bf16 %v438_v56, %v437_v55  ;;  %v3001_v58 = vld [vmem:[#allocation3 + $0xc4] ss:$8 sps:$4 sm:$0xff]   ;;  %v3002_v60 = vld [vmem:[#allocation3 + $0xd0] ss:$8 sps:$4 sm:$0xff]   ;;  %v3004_v61 = vld [vmem:[#allocation3 + $0xd4] ss:$8 sps:$4 sm:$0xff]  }
  0x58   : > { %594 = vmatprep.mubr.bf16.mxu0 %v3567_v1  ;;  %1265 = vmatpush1.bf16.msra.mxu0 %v2969_v23  ;;  %v3007_v62 = vld [vmem:[#allocation3 + $0xe4] ss:$8 sps:$4 sm:$0xff]   ;;  %v3005_v63 = vld [vmem:[#allocation3 + $0xe0] ss:$8 sps:$4 sm:$0xff]   ;;  %v3008_v0 = vld [vmem:[#allocation3 + $0xf0] ss:$8 sps:$4 sm:$0xff]  }
  0x59   : > { %1266 = vmatprep.subr.bf16.mxu0 %v2974_v24  ;;  %2621 = vmatmul.mubr.msk.bf16.gmra.mrb[4].mxu1 %vm517_vm0, %v440_v18  ;;  %v3010_v2 = vld [vmem:[#allocation3 + $0xf4] ss:$8 sps:$4 sm:$0xff]   ;;  %v3013_v3 = vld [vmem:[#allocation3 + $0x104] ss:$8 sps:$4 sm:$0xff]  }
  0x5a   : > { %707 = vmatprep.mubr.bf16.mxu1 %v3567_v1  ;;  %v455_v6 = vld [vmem:[%s4315_s2] sm:$0xf]  ;;  %v3067_v49 = vld [vmem:[%s4318_s5 + $0x24] ss:$8 sps:$4 sm:$0xff]  }
  0x5b   : > { %v3059_v36 = vld [vmem:[%s4318_s5] ss:$8 sps:$4 sm:$0xff]  }
  0x5c   : > { %1267 = vmatpush1.bf16.msra.mxu0 %v2972_v26 }
  0x5d   : > { %1268 = vmatprep.subr.bf16.mxu0 %v2977_v27 }
  0x5f   : > { %2614 = vmatmul.mubr.msk.bf16.gmra.mrb[8].mxu0 %vm517_vm0, %v441_v25 }
  0x60   : > { %604 = vmatprep.mubr.bf16.mxu0 %v3567_v1  ;;  %1269 = vmatpush1.bf16.msra.mxu0 %v2975_v30 }
  0x61   : > { %1270 = vmatprep.subr.bf16.mxu0 %v2980_v31  ;;  %2622 = vmatmul.mubr.msk.bf16.gmra.mrb[8].mxu1 %vm517_vm0, %v441_v25 }
  0x62   : > { %717 = vmatprep.mubr.bf16.mxu1 %v3567_v1 }
  0x64   : > { %1271 = vmatpush1.bf16.msra.mxu0 %v2978_v33 }
  0x65   : > { %1272 = vmatprep.subr.bf16.mxu0 %v2983_v34 }
  0x67   : > { %2615 = vmatmul.mubr.msk.bf16.gmra.mrb[12].mxu0 %vm517_vm0, %v442_v32 }
  0x68   : > { %614 = vmatprep.mubr.bf16.mxu0 %v3567_v1  ;;  %1273 = vmatpush1.bf16.msra.mxu0 %v2981_v37  ;;  %v3061_v37 = vld [vmem:[%s4318_s5 + $0x4] ss:$8 sps:$4 sm:$0xff]  }
  0x69   : > { %1274 = vmatprep.subr.bf16.mxu0 %v2986_v38  ;;  %2623 = vmatmul.mubr.msk.bf16.gmra.mrb[12].mxu1 %vm517_vm0, %v442_v32 }
  0x6a   : > { %727 = vmatprep.mubr.bf16.mxu1 %v3567_v1  ;;  %1738 = vmatprep.subr.bf16.mxu1 %v3061_v37 }
  0x6b   : > { %1739 = vmatpush1.bf16.msra.mxu1 %v3059_v36 }
  0x6c   : > { %1275 = vmatpush1.bf16.msra.mxu0 %v2984_v40  ;;  %v3064_v40 = vld [vmem:[%s4318_s5 + $0x14] ss:$8 sps:$4 sm:$0xff]  }
  0x6d   : > { %1276 = vmatprep.subr.bf16.mxu0 %v2989_v41  ;;  %1740 = vmatprep.subr.bf16.mxu1 %v3064_v40 }
  0x6f   : > { %2616 = vmatmul.mubr.msk.bf16.gmra.mrb[16].mxu0 %vm517_vm0, %v443_v39 }
  0x70   : > { %624 = vmatprep.mubr.bf16.mxu0 %v3567_v1  ;;  %1277 = vmatpush1.bf16.msra.mxu0 %v2987_v44  ;;  %v3062_v44 = vld [vmem:[%s4318_s5 + $0x10] ss:$8 sps:$4 sm:$0xff]  }
  0x71   : > { %1278 = vmatprep.subr.bf16.mxu0 %v2992_v45  ;;  %2624 = vmatmul.mubr.msk.bf16.gmra.mrb[16].mxu1 %vm517_vm0, %v443_v39 }
  0x72   : > { %737 = vmatprep.mubr.bf16.mxu1 %v3567_v1  ;;  %1741 = vmatpush1.bf16.msra.mxu1 %v3062_v44 }
  0x73   : > { %1742 = vmatprep.subr.bf16.mxu1 %v3067_v49  ;;  %v3025_v49 = vld [vmem:[#allocation3 + $0x144] ss:$8 sps:$4 sm:$0xff]  }
  0x74   : > { %1279 = vmatpush1.bf16.msra.mxu0 %v2990_v47 }
  0x75   : > { %1280 = vmatprep.subr.bf16.mxu0 %v2995_v48 }
  0x77   : > { %2617 = vmatmul.mubr.msk.bf16.gmra.mrb[20].mxu0 %vm517_vm0, %v444_v46 }
  0x78   : > { %634 = vmatprep.mubr.bf16.mxu0 %v3567_v1  ;;  %1281 = vmatpush1.bf16.msra.mxu0 %v2993_v51 }
  0x79   : > { %1282 = vmatprep.subr.bf16.mxu0 %v2998_v52  ;;  %2625 = vmatmul.mubr.msk.bf16.gmra.mrb[20].mxu1 %vm517_vm0, %v444_v46 }
  0x7a   : > { %747 = vmatprep.mubr.bf16.mxu1 %v3567_v1 }
  0x7c   : > { %1283 = vmatpush1.bf16.msra.mxu0 %v2996_v54 }
  0x7d   : > { %1284 = vmatprep.subr.bf16.mxu0 %v3001_v58 }
  0x7f   : > { %2618 = vmatmul.mubr.msk.bf16.gmra.mrb[24].mxu0 %vm517_vm0, %v445_v53 }
  0x80   : > { %644 = vmatprep.mubr.bf16.mxu0 %v3567_v1  ;;  %1285 = vmatpush1.bf16.msra.mxu0 %v2999_v59 }
  0x81   : > { %2626 = vmatmul.mubr.msk.bf16.gmra.mrb[24].mxu1 %vm517_vm0, %v445_v53  ;;  %1286 = vmatprep.subr.bf16.mxu0 %v3004_v61  ;;  %v3011_v53 = vld [vmem:[#allocation3 + $0x100] ss:$8 sps:$4 sm:$0xff]  }
  0x82   : > { %757 = vmatprep.mubr.bf16.mxu1 %v3567_v1  ;;  %v457_v1 = vlaneseq }
  0x84   : > { %1287 = vmatpush1.bf16.msra.mxu0 %v3002_v60  ;;  %v458_v4 = vshrl.u32 %v457_v1, 7 }
  0x85   : > { %1288 = vmatprep.subr.bf16.mxu0 %v3007_v62 }
  0x86   : > { %v3800_v5 = vsub.s32 0, %v458_v4  ;;  %v3805_v7 = vsub.s32 1, %v458_v4  ;;  %v467_v17 = vsub.s32 2, %v458_v4  ;;  %v471_v19 = vsub.s32 3, %v458_v4  ;;  %v3014_v4 = vld [vmem:[#allocation3 + $0x110] ss:$8 sps:$4 sm:$0xff]  }
  0x87   : > { %2619 = vmatmul.mubr.msk.bf16.gmra.mrb[28].mxu0 %vm517_vm0, %v446_v57 }
  0x88   : > { %1289 = vmatpush1.bf16.msra.mxu0 %v3005_v63  ;;  %v3808_v8 = vrot.slane %v455_v6, %v3800_v5  ;;  %v3811_v9 = vrot.slane %v455_v6, %v3805_v7  ;;  %v3817_v20 = vrot.slane %v455_v6, %v467_v17  ;;  %v3819_v23 = vrot.slane %v455_v6, %v471_v19  ;;  %v3065_v63 = vld [vmem:[%s4318_s5 + $0x20] ss:$8 sps:$4 sm:$0xff]   ;;  %v3073_v19 = vld [vmem:[%s4318_s5 + $0x44] ss:$8 sps:$4 sm:$0xff]  }
  0x89   : > { %2627 = vmatmul.mubr.msk.bf16.gmra.mrb[28].mxu1 %vm517_vm0, %v446_v57  ;;  %1290 = vmatprep.subr.bf16.mxu0 %v3010_v2  ;;  %v3016_v57 = vld [vmem:[#allocation3 + $0x114] ss:$8 sps:$4 sm:$0xff]  }
  0x8a   : > { %1743 = vmatpush1.bf16.msra.mxu1 %v3065_v63 }
  0x8c   : > { %1291 = vmatpush1.bf16.msra.mxu0 %v3008_v0 }
  0x8d   : > { %1373 = vmatprep.subr.bf16.mxu0 %v3013_v3  ;;  %v3070_v3 = vld [vmem:[%s4318_s5 + $0x34] ss:$8 sps:$4 sm:$0xff]  }
  0x8e   : > { %1744 = vmatprep.subr.bf16.mxu1 %v3070_v3 }
 0x122   : > { %v576_v10 = vpop.f32.mrb[0].mxu0 }
 0x123   : > { %v577_v11 = vadd.f32 %v576_v10, %v3808_v8  ;;  %v578_v12 = vpop.f32.mrb[1].mxu0 }
 0x124   : > { %v579_v13 = vadd.f32 %v578_v12, %v3811_v9  ;;  %v580_v14 = vpop.f32.mrb[2].mxu0  ;;  %v689_v22 = vpop.f32.mrb[0].mxu1 }
 0x125   : > { %3171 = vtanh.f32 %v577_v11  ;;  %v581_v15 = vadd.f32 %v580_v14, %v3808_v8  ;;  %v582_v16 = vpop.f32.mrb[3].mxu0  ;;  %v691_v26 = vpop.f32.mrb[1].mxu1  ;;  %v690_v32 = vadd.f32 %v689_v22, %v3817_v20  ;;  %v3019_v11 = vld [vmem:[#allocation3 + $0x124] ss:$8 sps:$4 sm:$0xff]  }
 0x126   : > { %3173 = vtanh.f32 %v579_v13  ;;  %v583_v18 = vadd.f32 %v582_v16, %v3811_v9  ;;  %v693_v29 = vpop.f32.mrb[2].mxu1  ;;  %v692_v35 = vadd.f32 %v691_v26, %v3819_v23  ;;  %v3068_v14 = vld [vmem:[%s4318_s5 + $0x30] ss:$8 sps:$4 sm:$0xff]   ;;  %v3017_v26 = vld [vmem:[#allocation3 + $0x120] ss:$8 sps:$4 sm:$0xff]  }
 0x127   : > { %3175 = vtanh.f32 %v581_v15  ;;  %v695_v33 = vpop.f32.mrb[3].mxu1  ;;  %v694_v39 = vadd.f32 %v693_v29, %v3817_v20  ;;  %1745 = vmatpush1.bf16.msra.mxu1 %v3068_v14  ;;  %v3077_v14 = vld [vmem:[%s4318_s5 + $0x60] ss:$8 sps:$4 sm:$0xff]  }
 0x128   : > { %3177 = vtanh.f32 %v583_v18  ;;  %v696_v42 = vadd.f32 %v695_v33, %v3819_v23  ;;  %1746 = vmatprep.subr.bf16.mxu1 %v3073_v19  ;;  %v3082_v19 = vld [vmem:[%s4318_s5 + $0x74] ss:$8 sps:$4 sm:$0xff]  }
 0x12a   : > { %v586_v21 = vpop.f32.mrb[4].mxu0 }
 0x12b   : > { %v587_v24 = vadd.f32 %v586_v21, %v3808_v8  ;;  %v588_v25 = vpop.f32.mrb[5].mxu0 }
 0x12c   : > { %v589_v27 = vadd.f32 %v588_v25, %v3811_v9  ;;  %v590_v28 = vpop.f32.mrb[6].mxu0  ;;  %v699_v48 = vpop.f32.mrb[4].mxu1 }
 0x12d   : > { %3179 = vtanh.f32 %v587_v24  ;;  %v591_v30 = vadd.f32 %v590_v28, %v3808_v8  ;;  %v592_v31 = vpop.f32.mrb[7].mxu0  ;;  %v701_v54 = vpop.f32.mrb[5].mxu1  ;;  %v700_v61 = vadd.f32 %v699_v48, %v3817_v20 }
 0x12e   : > { %3181 = vtanh.f32 %v589_v27  ;;  %v593_v34 = vadd.f32 %v592_v31, %v3811_v9  ;;  %v703_v58 = vpop.f32.mrb[6].mxu1  ;;  %v702_v2 = vadd.f32 %v701_v54, %v3819_v23  ;;  %v3022_v31 = vld [vmem:[#allocation3 + $0x134] ss:$8 sps:$4 sm:$0xff]  }
 0x12f   : > { %v3172_v38 = vpop.eup %3171  ;;  %3183 = vtanh.f32 %v591_v30  ;;  %v705_v62 = vpop.f32.mrb[7].mxu1  ;;  %v704_v6 = vadd.f32 %v703_v58, %v3817_v20 }
 0x130   : > { %v3174_v41 = vpop.eup %3173  ;;  %3185 = vtanh.f32 %v593_v34  ;;  %v706_v12 = vadd.f32 %v705_v62, %v3819_v23  ;;  %v3023_v62 = vld [vmem:[#allocation3 + $0x140] ss:$8 sps:$4 sm:$0xff]  }
 0x131   : > { %v3176_v43 = vpop.eup %3175  ;;  %3187 = vtanh.f32 %v690_v32 }
 0x132   : > { %v3178_v45 = vpop.eup %3177  ;;  %v596_v46 = vpop.f32.mrb[8].mxu0  ;;  %v832_v47 = vpack.c.bf16 %v3176_v43, %v3172_v38  ;;  %3189 = vtanh.f32 %v692_v35  ;;  %v3071_v38 = vld [vmem:[%s4318_s5 + $0x40] ss:$8 sps:$4 sm:$0xff]   ;;  %v3076_v43 = vld [vmem:[%s4318_s5 + $0x54] ss:$8 sps:$4 sm:$0xff]  }
 0x133   : > { %v597_v50 = vadd.f32 %v596_v46, %v3808_v8  ;;  %v598_v51 = vpop.f32.mrb[9].mxu0  ;;  %v833_v52 = vpack.c.bf16 %v3178_v45, %v3174_v41  ;;  %3191 = vtanh.f32 %v694_v39  ;;  %v3020_v45 = vld [vmem:[#allocation3 + $0x130] ss:$8 sps:$4 sm:$0xff]   ;;  %1747 = vmatpush1.bf16.msra.mxu1 %v3071_v38  ;;  %v3085_v38 = vld [vmem:[%s4318_s5 + $0x84] ss:$8 sps:$4 sm:$0xff]  }
 0x134   : > { %v599_v55 = vadd.f32 %v598_v51, %v3811_v9  ;;  %v600_v56 = vpop.f32.mrb[10].mxu0  ;;  %3193 = vtanh.f32 %v696_v42  ;;  %v709_v18 = vpop.f32.mrb[8].mxu1  ;;  %1748 = vmatprep.subr.bf16.mxu1 %v3076_v43 }
 0x135   : > { %3195 = vtanh.f32 %v597_v50  ;;  %v601_v59 = vadd.f32 %v600_v56, %v3808_v8  ;;  %v602_v60 = vpop.f32.mrb[11].mxu0  ;;  %1292 = vmatprep.mubr.bf16.mxu0 %v833_v52  ;;  %v711_v27 = vpop.f32.mrb[9].mxu1  ;;  %v710_v36 = vadd.f32 %v709_v18, %v3817_v20  ;;  %v3074_v52 = vld [vmem:[%s4318_s5 + $0x50] ss:$8 sps:$4 sm:$0xff]  }
 0x136   : > { %3197 = vtanh.f32 %v599_v55  ;;  %v603_v0 = vadd.f32 %v602_v60, %v3811_v9  ;;  %1293 = vmatmul.mubr.bf16.vlgmr.msra.gmra.mrb[32].mxu0 %v832_v47  ;;  %v713_v32 = vpop.f32.mrb[10].mxu1  ;;  %v712_v41 = vadd.f32 %v711_v27, %v3819_v23 }
 0x137   : > { %v3180_v1 = vpop.eup %3179  ;;  %3199 = vtanh.f32 %v601_v59  ;;  %1374 = vmatpush1.bf16.msra.mxu0 %v3011_v53  ;;  %v715_v37 = vpop.f32.mrb[11].mxu1  ;;  %v714_v46 = vadd.f32 %v713_v32, %v3817_v20  ;;  %1749 = vmatpush1.bf16.msra.mxu1 %v3074_v52  ;;  %v3080_v32 = vld [vmem:[%s4318_s5 + $0x70] ss:$8 sps:$4 sm:$0xff]  }
 0x138   : > { %v3182_v10 = vpop.eup %3181  ;;  %3201 = vtanh.f32 %v603_v0  ;;  %1375 = vmatprep.subr.bf16.mxu0 %v3016_v57  ;;  %v716_v50 = vadd.f32 %v715_v37, %v3819_v23  ;;  %v3079_v57 = vld [vmem:[%s4318_s5 + $0x64] ss:$8 sps:$4 sm:$0xff]  }
 0x139   : > { %v3184_v13 = vpop.eup %3183  ;;  %3203 = vtanh.f32 %v700_v61  ;;  %1750 = vmatprep.subr.bf16.mxu1 %v3079_v57 }
 0x13a   : > { %v3186_v15 = vpop.eup %3185  ;;  %v606_v16 = vpop.f32.mrb[12].mxu0  ;;  %v836_v17 = vpack.c.bf16 %v3184_v13, %v3180_v1  ;;  %3205 = vtanh.f32 %v702_v2  ;;  %v3028_v1 = vld [vmem:[#allocation3 + $0x154] ss:$8 sps:$4 sm:$0xff]  }
 0x13b   : > { %v3864_v21 = vpop.eup %3187  ;;  %v607_v22 = vadd.f32 %v606_v16, %v3808_v8  ;;  %1376 = vmatpush1.bf16.msra.mxu0 %v3014_v4  ;;  %v608_v24 = vpop.f32.mrb[13].mxu0  ;;  %v837_v25 = vpack.c.bf16 %v3186_v15, %v3182_v10  ;;  %3207 = vtanh.f32 %v704_v6  ;;  %1751 = vmatpush1.bf16.msra.mxu1 %v3077_v14 }
 0x13c   : > { %v3867_v28 = vpop.eup %3189  ;;  %v609_v29 = vadd.f32 %v608_v24, %v3811_v9  ;;  %v610_v30 = vpop.f32.mrb[14].mxu0  ;;  %1377 = vmatprep.subr.bf16.mxu0 %v3019_v11  ;;  %3209 = vtanh.f32 %v706_v12  ;;  %v3026_v24 = vld [vmem:[#allocation3 + $0x150] ss:$8 sps:$4 sm:$0xff]   ;;  %1752 = vmatprep.subr.bf16.mxu1 %v3082_v19 }
 0x13d   : > { %v3870_v33 = vpop.eup %3191  ;;  %3211 = vtanh.f32 %v607_v22  ;;  %v611_v34 = vadd.f32 %v610_v30, %v3808_v8  ;;  %v612_v35 = vpop.f32.mrb[15].mxu0  ;;  %1302 = vmatprep.mubr.bf16.mxu0 %v837_v25 }
 0x13e   : > { %v3877_v39 = vpop.eup %3193  ;;  %3213 = vtanh.f32 %v609_v29  ;;  %v613_v40 = vadd.f32 %v612_v35, %v3811_v9  ;;  %1303 = vmatmul.mubr.bf16.gmra.mrb[36].mxu0 %v836_v17  ;;  %v834_v42 = vpack.c.bf16 %v3870_v33, %v3864_v21  ;;  %v719_v56 = vpop.f32.mrb[12].mxu1  ;;  %v3031_v29 = vld [vmem:[#allocation3 + $0x164] ss:$8 sps:$4 sm:$0xff]  }
 0x13f   : > { %v3196_v44 = vpop.eup %3195  ;;  %3215 = vtanh.f32 %v611_v34  ;;  %1378 = vmatpush1.bf16.msra.mxu0 %v3017_v26  ;;  %v835_v47 = vpack.c.bf16 %v3877_v39, %v3867_v28  ;;  %v721_v63 = vpop.f32.mrb[13].mxu1  ;;  %v720_v12 = vadd.f32 %v719_v56, %v3817_v20  ;;  %1753 = vmatpush1.bf16.msra.mxu1 %v3080_v32  ;;  %v3035_v32 = vld [vmem:[#allocation3 + $0x180] ss:$8 sps:$4 sm:$0xff]   ;;  %v3098_v33 = vld [vmem:[%s4318_s5 + $0xd0] ss:$8 sps:$4 sm:$0xff]  }
 0x140   : > { %v3198_v48 = vpop.eup %3197  ;;  %3217 = vtanh.f32 %v613_v40  ;;  %1379 = vmatprep.subr.bf16.mxu0 %v3022_v31  ;;  %v723_v4 = vpop.f32.mrb[14].mxu1  ;;  %v722_v17 = vadd.f32 %v721_v63, %v3819_v23  ;;  %1754 = vmatprep.subr.bf16.mxu1 %v3085_v38  ;;  %v3040_v38 = vld [vmem:[#allocation3 + $0x194] ss:$8 sps:$4 sm:$0xff]   ;;  %v3097_v21 = vld [vmem:[%s4318_s5 + $0xc4] ss:$8 sps:$4 sm:$0xff]  }
 0x141   : > { %v3200_v51 = vpop.eup %3199  ;;  %3219 = vtanh.f32 %v710_v36  ;;  %v725_v13 = vpop.f32.mrb[15].mxu1  ;;  %v724_v25 = vadd.f32 %v723_v4, %v3817_v20  ;;  %v3095_v28 = vld [vmem:[%s4318_s5 + $0xc0] ss:$8 sps:$4 sm:$0xff]   ;;  %v3100_v39 = vld [vmem:[%s4318_s5 + $0xd4] ss:$8 sps:$4 sm:$0xff]  }
 0x142   : > { %v3202_v53 = vpop.eup %3201  ;;  %v616_v54 = vpop.f32.mrb[16].mxu0  ;;  %v840_v55 = vpack.c.bf16 %v3200_v51, %v3196_v44  ;;  %3221 = vtanh.f32 %v712_v41  ;;  %v726_v30 = vadd.f32 %v725_v13, %v3819_v23  ;;  %v3034_v51 = vld [vmem:[#allocation3 + $0x174] ss:$8 sps:$4 sm:$0xff]  }
 0x143   : > { %v3896_v58 = vpop.eup %3203  ;;  %v617_v59 = vadd.f32 %v616_v54, %v3808_v8  ;;  %1380 = vmatpush1.bf16.msra.mxu0 %v3020_v45  ;;  %v618_v60 = vpop.f32.mrb[17].mxu0  ;;  %v841_v61 = vpack.c.bf16 %v3202_v53, %v3198_v48  ;;  %3223 = vtanh.f32 %v714_v46  ;;  %v3029_v45 = vld [vmem:[#allocation3 + $0x160] ss:$8 sps:$4 sm:$0xff]  }
 0x144   : > { %v3899_v0 = vpop.eup %3205  ;;  %v619_v2 = vadd.f32 %v618_v60, %v3811_v9  ;;  %v620_v3 = vpop.f32.mrb[18].mxu0  ;;  %1381 = vmatprep.subr.bf16.mxu0 %v3025_v49  ;;  %3225 = vtanh.f32 %v716_v50 }
 0x145   : > { %v3902_v6 = vpop.eup %3207  ;;  %3227 = vtanh.f32 %v617_v59  ;;  %v621_v10 = vadd.f32 %v620_v3, %v3808_v8  ;;  %v622_v11 = vpop.f32.mrb[19].mxu0  ;;  %1312 = vmatprep.mubr.bf16.mxu0 %v841_v61  ;;  %v3083_v59 = vld [vmem:[%s4318_s5 + $0x80] ss:$8 sps:$4 sm:$0xff]  }
 0x146   : > { %v3909_v15 = vpop.eup %3209  ;;  %3229 = vtanh.f32 %v619_v2  ;;  %v623_v16 = vadd.f32 %v622_v11, %v3811_v9  ;;  %1313 = vmatmul.mubr.bf16.gmra.mrb[40].mxu0 %v840_v55  ;;  %v838_v18 = vpack.c.bf16 %v3902_v6, %v3896_v58  ;;  %v729_v37 = vpop.f32.mrb[16].mxu1  ;;  %v3088_v2 = vld [vmem:[%s4318_s5 + $0x94] ss:$8 sps:$4 sm:$0xff]   ;;  %1755 = vmatpush1.bf16.msra.mxu1 %v3083_v59  ;;  %v3104_v58 = vld [vmem:[%s4318_s5 + $0xf0] ss:$8 sps:$4 sm:$0xff]  }
 0x147   : > { %v3212_v22 = vpop.eup %3211  ;;  %3231 = vtanh.f32 %v621_v10  ;;  %1382 = vmatpush1.bf16.msra.mxu0 %v3023_v62  ;;  %v839_v26 = vpack.c.bf16 %v3909_v15, %v3899_v0  ;;  %v731_v46 = vpop.f32.mrb[17].mxu1  ;;  %v730_v56 = vadd.f32 %v729_v37, %v3817_v20  ;;  %1756 = vmatprep.subr.bf16.mxu1 %v3088_v2  ;;  %v3038_v59 = vld [vmem:[#allocation3 + $0x190] ss:$8 sps:$4 sm:$0xff]   ;;  %v3109_v6 = vld [vmem:[#allocation5 + $0x4] ss:$8 sps:$4 sm:$0xff]  }
 0x148   : > { %v3214_v27 = vpop.eup %3213  ;;  %3233 = vtanh.f32 %v623_v16  ;;  %1383 = vmatprep.subr.bf16.mxu0 %v3028_v1  ;;  %v733_v52 = vpop.f32.mrb[18].mxu1  ;;  %v732_v62 = vadd.f32 %v731_v46, %v3819_v23  ;;  %v3032_v1 = vld [vmem:[#allocation3 + $0x170] ss:$8 sps:$4 sm:$0xff]   ;;  %v928_v15 = vld [vmem:[%s4317_s4] sm:$0x3] }
 0x149   : > { %v3216_v31 = vpop.eup %3215  ;;  %3235 = vtanh.f32 %v720_v12  ;;  %v735_v57 = vpop.f32.mrb[19].mxu1  ;;  %v734_v4 = vadd.f32 %v733_v52, %v3817_v20  ;;  %v3037_v12 = vld [vmem:[#allocation3 + $0x184] ss:$8 sps:$4 sm:$0xff]   ;;  %v3106_v0 = vld [vmem:[%s4318_s5 + $0xf4] ss:$8 sps:$4 sm:$0xff]  }
 0x14a   : > { %v3218_v34 = vpop.eup %3217  ;;  %v626_v35 = vpop.f32.mrb[20].mxu0  ;;  %v844_v36 = vpack.c.bf16 %v3216_v31, %v3212_v22  ;;  %3237 = vtanh.f32 %v722_v17  ;;  %v736_v13 = vadd.f32 %v735_v57, %v3819_v23  ;;  %v3086_v16 = vld [vmem:[%s4318_s5 + $0x90] ss:$8 sps:$4 sm:$0xff]  }
 0x14b   : > { %v3928_v40 = vpop.eup %3219  ;;  %v627_v41 = vadd.f32 %v626_v35, %v3808_v8  ;;  %1384 = vmatpush1.bf16.msra.mxu0 %v3026_v24  ;;  %v628_v43 = vpop.f32.mrb[21].mxu0  ;;  %v845_v44 = vpack.c.bf16 %v3218_v34, %v3214_v27  ;;  %3239 = vtanh.f32 %v724_v25  ;;  %v3091_v25 = vld [vmem:[%s4318_s5 + $0xa4] ss:$8 sps:$4 sm:$0xff]   ;;  %1757 = vmatpush1.bf16.msra.mxu1 %v3086_v16 }
 0x14c   : > { %v3931_v48 = vpop.eup %3221  ;;  %v629_v49 = vadd.f32 %v628_v43, %v3811_v9  ;;  %v630_v50 = vpop.f32.mrb[22].mxu0  ;;  %1385 = vmatprep.subr.bf16.mxu0 %v3031_v29  ;;  %3241 = vtanh.f32 %v726_v30  ;;  %1758 = vmatprep.subr.bf16.mxu1 %v3091_v25  ;;  %v3041_v25 = vld [vmem:[#allocation3 + $0x1a0] ss:$8 sps:$4 sm:$0xff]  }
 0x14d   : > { %v3934_v53 = vpop.eup %3223  ;;  %3243 = vtanh.f32 %v627_v41  ;;  %v631_v54 = vadd.f32 %v630_v50, %v3808_v8  ;;  %v632_v55 = vpop.f32.mrb[23].mxu0  ;;  %1322 = vmatprep.mubr.bf16.mxu0 %v845_v44  ;;  %v3089_v50 = vld [vmem:[%s4318_s5 + $0xa0] ss:$8 sps:$4 sm:$0xff]  }
 0x14e   : > { %v3941_v60 = vpop.eup %3225  ;;  %3245 = vtanh.f32 %v629_v49  ;;  %v633_v61 = vadd.f32 %v632_v55, %v3811_v9  ;;  %1323 = vmatmul.mubr.bf16.gmra.mrb[44].mxu0 %v844_v36  ;;  %v842_v63 = vpack.c.bf16 %v3934_v53, %v3928_v40  ;;  %v739_v24 = vpop.f32.mrb[20].mxu1 }
 0x14f   : > { %v3228_v3 = vpop.eup %3227  ;;  %3247 = vtanh.f32 %v631_v54  ;;  %1386 = vmatpush1.bf16.msra.mxu0 %v3029_v45  ;;  %v843_v10 = vpack.c.bf16 %v3941_v60, %v3931_v48  ;;  %v741_v34 = vpop.f32.mrb[21].mxu1  ;;  %v740_v46 = vadd.f32 %v739_v24, %v3817_v20  ;;  %1759 = vmatpush1.bf16.msra.mxu1 %v3089_v50 }
 0x150   : > { %v3230_v11 = vpop.eup %3229  ;;  %3249 = vtanh.f32 %v633_v61  ;;  %1387 = vmatprep.subr.bf16.mxu0 %v3034_v51  ;;  %v743_v41 = vpop.f32.mrb[22].mxu1  ;;  %v742_v54 = vadd.f32 %v741_v34, %v3819_v23  ;;  %v3046_v34 = vld [vmem:[#allocation3 + $0x1b4] ss:$8 sps:$4 sm:$0xff]  }
 0x151   : > { %v3232_v14 = vpop.eup %3231  ;;  %3251 = vtanh.f32 %v730_v56  ;;  %v745_v49 = vpop.f32.mrb[23].mxu1  ;;  %v3094_v56 = vld [vmem:[%s4318_s5 + $0xb4] ss:$8 sps:$4 sm:$0xff]   ;;  %v744_v61 = vadd.f32 %v743_v41, %v3817_v20 }
 0x152   : > { %v3234_v17 = vpop.eup %3233  ;;  %v636_v19 = vpop.f32.mrb[24].mxu0  ;;  %v848_v22 = vpack.c.bf16 %v3232_v14, %v3228_v3  ;;  %3253 = vtanh.f32 %v732_v62  ;;  %v3043_v3 = vld [vmem:[#allocation3 + $0x1a4] ss:$8 sps:$4 sm:$0xff]   ;;  %1760 = vmatprep.subr.bf16.mxu1 %v3094_v56 }
 0x153   : > { %v3960_v27 = vpop.eup %3235  ;;  %v637_v29 = vadd.f32 %v636_v19, %v3808_v8  ;;  %1388 = vmatpush1.bf16.msra.mxu0 %v3032_v1  ;;  %v638_v30 = vpop.f32.mrb[25].mxu0  ;;  %v849_v31 = vpack.c.bf16 %v3234_v17, %v3230_v11  ;;  %3255 = vtanh.f32 %v734_v4  ;;  %v746_v1 = vadd.f32 %v745_v49, %v3819_v23  ;;  %v3092_v11 = vld [vmem:[%s4318_s5 + $0xb0] ss:$8 sps:$4 sm:$0xff]  }
 0x154   : > { %v3963_v35 = vpop.eup %3237  ;;  %v639_v36 = vadd.f32 %v638_v30, %v3811_v9  ;;  %v640_v37 = vpop.f32.mrb[26].mxu0  ;;  %1389 = vmatprep.subr.bf16.mxu0 %v3037_v12  ;;  %3257 = vtanh.f32 %v736_v13  ;;  %1761 = vmatpush1.bf16.msra.mxu1 %v3092_v11 }
 0x155   : > { %v3966_v43 = vpop.eup %3239  ;;  %3259 = vtanh.f32 %v637_v29  ;;  %v641_v44 = vadd.f32 %v640_v37, %v3808_v8  ;;  %v642_v45 = vpop.f32.mrb[27].mxu0  ;;  %1332 = vmatprep.mubr.bf16.mxu0 %v849_v31  ;;  %1762 = vmatprep.subr.bf16.mxu1 %v3097_v21 }
 0x156   : > { %v3973_v51 = vpop.eup %3241  ;;  %3261 = vtanh.f32 %v639_v36  ;;  %v643_v52 = vadd.f32 %v642_v45, %v3811_v9  ;;  %1333 = vmatmul.mubr.bf16.gmra.mrb[48].mxu0 %v848_v22  ;;  %v846_v55 = vpack.c.bf16 %v3966_v43, %v3960_v27  ;;  %v749_v16 = vpop.f32.mrb[24].mxu1 }
 0x157   : > { %v3244_v57 = vpop.eup %3243  ;;  %3263 = vtanh.f32 %v641_v44  ;;  %1390 = vmatpush1.bf16.msra.mxu0 %v3035_v32  ;;  %v847_v62 = vpack.c.bf16 %v3973_v51, %v3963_v35  ;;  %v751_v29 = vpop.f32.mrb[25].mxu1  ;;  %v750_v44 = vadd.f32 %v749_v16, %v3817_v20 }
 0x158   : > { %v3246_v2 = vpop.eup %3245  ;;  %3265 = vtanh.f32 %v643_v52  ;;  %1391 = vmatprep.subr.bf16.mxu0 %v3040_v38  ;;  %v753_v36 = vpop.f32.mrb[26].mxu1  ;;  %v752_v50 = vadd.f32 %v751_v29, %v3819_v23  ;;  %1763 = vmatpush1.bf16.msra.mxu1 %v3095_v28  ;;  %v3116_v28 = vld [vmem:[#allocation5 + $0x30] ss:$8 sps:$4 sm:$0xff]  }
 0x159   : > { %v3248_v4 = vpop.eup %3247  ;;  %3267 = vtanh.f32 %v740_v46  ;;  %v755_v45 = vpop.f32.mrb[27].mxu1  ;;  %v754_v56 = vadd.f32 %v753_v36, %v3817_v20  ;;  %1764 = vmatprep.subr.bf16.mxu1 %v3100_v39  ;;  %v3121_v39 = vld [vmem:[#allocation5 + $0x44] ss:$8 sps:$4 sm:$0xff]  }
 0x15a   : > { %v3250_v12 = vpop.eup %3249  ;;  %v646_v13 = vpop.f32.mrb[28].mxu0  ;;  %v852_v14 = vpack.c.bf16 %v3248_v4, %v3244_v57  ;;  %3269 = vtanh.f32 %v742_v54 }
 0x15b   : > { %v3989_v17 = vpop.eup %3251  ;;  %v647_v19 = vadd.f32 %v646_v13, %v3808_v8  ;;  %1392 = vmatpush1.bf16.msra.mxu0 %v3038_v59  ;;  %v648_v22 = vpop.f32.mrb[29].mxu0  ;;  %v853_v24 = vpack.c.bf16 %v3250_v12, %v3246_v2  ;;  %3271 = vtanh.f32 %v744_v61  ;;  %v3049_v61 = vld [vmem:[#allocation3 + $0x1c4] ss:$8 sps:$4 sm:$0xff]   ;;  %v3047_v13 = vld [vmem:[#allocation3 + $0x1c0] ss:$8 sps:$4 sm:$0xff]  }
 0x15c   : > { %v3992_v30 = vpop.eup %3253  ;;  %v649_v31 = vadd.f32 %v648_v22, %v3811_v9  ;;  %v650_v32 = vpop.f32.mrb[30].mxu0  ;;  %1393 = vmatprep.subr.bf16.mxu0 %v3043_v3  ;;  %3273 = vtanh.f32 %v746_v1  ;;  %v3052_v22 = vld [vmem:[#allocation3 + $0x1d4] ss:$8 sps:$4 sm:$0xff]   ;;  %1765 = vmatpush1.bf16.msra.mxu1 %v3098_v33 }
 0x15d   : > { %v3995_v37 = vpop.eup %3255  ;;  %3275 = vtanh.f32 %v647_v19  ;;  %v651_v38 = vadd.f32 %v650_v32, %v3808_v8  ;;  %v652_v41 = vpop.f32.mrb[31].mxu0  ;;  %1342 = vmatprep.mubr.bf16.mxu0 %v853_v24  ;;  %v3044_v8 = vld [vmem:[#allocation3 + $0x1b0] ss:$8 sps:$4 sm:$0xff]  }
 0x15e   : > { %v3999_v46 = vpop.eup %3257  ;;  %3277 = vtanh.f32 %v649_v31  ;;  %v653_v49 = vadd.f32 %v652_v41, %v3811_v9  ;;  %1343 = vmatmul.mubr.bf16.gmra.mrb[52].mxu0 %v852_v14  ;;  %v850_v52 = vpack.c.bf16 %v3995_v37, %v3989_v17  ;;  %v756_v9 = vadd.f32 %v755_v45, %v3819_v23  ;;  %v759_v4 = vpop.f32.mrb[28].mxu1 }
 0x15f   : > { %v3260_v54 = vpop.eup %3259  ;;  %3279 = vtanh.f32 %v651_v38  ;;  %1394 = vmatpush1.bf16.msra.mxu0 %v3041_v25  ;;  %v851_v57 = vpack.c.bf16 %v3999_v46, %v3992_v30  ;;  %v760_v14 = vadd.f32 %v759_v4, %v3817_v20  ;;  %v761_v16 = vpop.f32.mrb[29].mxu1 }
 0x160   : > { %v3262_v59 = vpop.eup %3261  ;;  %3281 = vtanh.f32 %v653_v49  ;;  %1395 = vmatprep.subr.bf16.mxu0 %v3046_v34  ;;  %v762_v24 = vadd.f32 %v761_v16, %v3819_v23  ;;  %v763_v25 = vpop.f32.mrb[30].mxu1 }
 0x161   : > { %v3264_v2 = vpop.eup %3263  ;;  %3283 = vtanh.f32 %v750_v44  ;;  %v764_v31 = vadd.f32 %v763_v25, %v3817_v20  ;;  %v765_v32 = vpop.f32.mrb[31].mxu1  ;;  %v3050_v44 = vld [vmem:[#allocation3 + $0x1d0] ss:$8 sps:$4 sm:$0xff]  }
 0x162   : > { %v3266_v3 = vpop.eup %3265  ;;  %v856_v1 = vpack.c.bf16 %v3264_v2, %v3260_v54  ;;  %3285 = vtanh.f32 %v752_v50  ;;  %v766_v36 = vadd.f32 %v765_v32, %v3819_v23  ;;  %v3055_v50 = vld [vmem:[#allocation3 + $0x1e4] ss:$8 sps:$4 sm:$0xff]   ;;  %v3058_v23 = vld [vmem:[#allocation3 + $0x1f4] ss:$8 sps:$4 sm:$0xff]  }
 0x163   : > { %v4009_v11 = vpop.eup %3267  ;;  %1396 = vmatpush1.bf16.msra.mxu0 %v3044_v8  ;;  %v857_v12 = vpack.c.bf16 %v3266_v3, %v3262_v59  ;;  %3287 = vtanh.f32 %v754_v56 }
 0x164   : > { %v3270_v19 = vpop.eup %3269  ;;  %1397 = vmatprep.subr.bf16.mxu0 %v3049_v61  ;;  %3289 = vtanh.f32 %v756_v9  ;;  %v3053_v61 = vld [vmem:[#allocation3 + $0x1e0] ss:$8 sps:$4 sm:$0xff]  }
 0x165   : > { %v3272_v29 = vpop.eup %3271  ;;  %1352 = vmatprep.mubr.bf16.mxu0 %v857_v12  ;;  %3291 = vtanh.f32 %v760_v14 }
 0x166   : > { %v3274_v34 = vpop.eup %3273  ;;  %1353 = vmatmul.mubr.bf16.gmra.mrb[56].mxu0 %v856_v1  ;;  %3293 = vtanh.f32 %v762_v24  ;;  %v854_v38 = vpack.c.bf16 %v3272_v29, %v4009_v11  ;;  %v3056_v11 = vld [vmem:[#allocation3 + $0x1f0] ss:$8 sps:$4 sm:$0xff]  }
 0x167   : > { %v3276_v41 = vpop.eup %3275  ;;  %1398 = vmatpush1.bf16.msra.mxu0 %v3047_v13  ;;  %3295 = vtanh.f32 %v764_v31  ;;  %v855_v45 = vpack.c.bf16 %v3274_v34, %v3270_v19 }
 0x168   : > { %v3278_v49 = vpop.eup %3277  ;;  %1399 = vmatprep.subr.bf16.mxu0 %v3052_v22  ;;  %3297 = vtanh.f32 %v766_v36 }
 0x169   : > { %v3280_v54 = vpop.eup %3279 }
 0x16a   : > { %v3282_v8 = vpop.eup %3281  ;;  %v860_v20 = vpack.c.bf16 %v3280_v54, %v3276_v41 }
 0x16b   : > { %v3284_v56 = vpop.eup %3283  ;;  %1400 = vmatpush1.bf16.msra.mxu0 %v3050_v44  ;;  %v861_v59 = vpack.c.bf16 %v3282_v8, %v3278_v49 }
 0x16c   : > { %v3286_v9 = vpop.eup %3285  ;;  %1401 = vmatprep.subr.bf16.mxu0 %v3055_v50 }
 0x16d   : > { %v3288_v2 = vpop.eup %3287  ;;  %1362 = vmatprep.mubr.bf16.mxu0 %v861_v59  ;;  %v3115_v59 = vld [vmem:[#allocation5 + $0x24] ss:$8 sps:$4 sm:$0xff]  }
 0x16e   : > { %v3290_v3 = vpop.eup %3289  ;;  %1363 = vmatmul.mubr.bf16.gmra.mrb[60].mxu0 %v860_v20  ;;  %v858_v1 = vpack.c.bf16 %v3288_v2, %v3284_v56  ;;  %v3110_v20 = vld [vmem:[#allocation5 + $0x10] ss:$8 sps:$4 sm:$0xff]  }
 0x16f   : > { %v3292_v4 = vpop.eup %3291  ;;  %1402 = vmatpush1.bf16.msra.mxu0 %v3053_v61  ;;  %1405 = vmatprep.mubr.bf16.mxu0 %v835_v47  ;;  %v859_v12 = vpack.c.bf16 %v3290_v3, %v3286_v9  ;;  %v3101_v47 = vld [vmem:[%s4318_s5 + $0xe0] ss:$8 sps:$4 sm:$0xff]  }
 0x170   : > { %v3294_v13 = vpop.eup %3293  ;;  %1403 = vmatprep.subr.bf16.mxu0 %v3058_v23 }
 0x171   : > { %v3296_v14 = vpop.eup %3295 }
 0x172   : > { %v3298_v16 = vpop.eup %3297  ;;  %v862_v19 = vpack.c.bf16 %v3296_v14, %v3292_v4  ;;  %v3118_v14 = vld [vmem:[#allocation5 + $0x34] ss:$8 sps:$4 sm:$0xff]  }
 0x173   : > { %1404 = vmatpush1.bf16.msra.mxu0 %v3056_v11  ;;  %v863_v22 = vpack.c.bf16 %v3298_v16, %v3294_v13  ;;  %v3113_v11 = vld [vmem:[#allocation5 + $0x20] ss:$8 sps:$4 sm:$0xff]  }
 0x176   : > { %1406 = vmatmul.mubr.bf16.vlgmr.msra.gmra.mrb[32].mxu0 %v834_v42  ;;  %v3103_v42 = vld [vmem:[%s4318_s5 + $0xe4] ss:$8 sps:$4 sm:$0xff]  }
 0x177   : > { %1415 = vmatprep.mubr.bf16.mxu0 %v839_v26  ;;  %1766 = vmatprep.subr.bf16.mxu1 %v3103_v42  ;;  %v4077_v26 = vrot.slane %v928_v15, %v3805_v7 }
 0x178   : > { %1767 = vmatpush1.bf16.msra.mxu1 %v3101_v47 }
 0x179   : > { %1768 = vmatprep.subr.bf16.mxu1 %v3106_v0 }
 0x17c   : > { %1769 = vmatpush1.bf16.msra.mxu1 %v3104_v58 }
 0x17d   : > { %2103 = vmatprep.subr.bf16.mxu1 %v3109_v6 }
 0x17e   : > { %1416 = vmatmul.mubr.bf16.gmra.mrb[36].mxu0 %v838_v18  ;;  %v4074_v18 = vrot.slane %v928_v15, %v3800_v5 }
 0x17f   : > { %1425 = vmatprep.mubr.bf16.mxu0 %v843_v10 }
 0x186   : > { %1426 = vmatmul.mubr.bf16.gmra.mrb[40].mxu0 %v842_v63 }
 0x187   : > { %1435 = vmatprep.mubr.bf16.mxu0 %v847_v62 }
 0x18e   : > { %1436 = vmatmul.mubr.bf16.gmra.mrb[44].mxu0 %v846_v55 }
 0x18f   : > { %1445 = vmatprep.mubr.bf16.mxu0 %v851_v57 }
 0x196   : > { %1446 = vmatmul.mubr.bf16.gmra.mrb[48].mxu0 %v850_v52 }
 0x197   : > { %1455 = vmatprep.mubr.bf16.mxu0 %v855_v45  ;;  %v3112_v45 = vld [vmem:[#allocation5 + $0x14] ss:$8 sps:$4 sm:$0xff]  }
 0x19e   : > { %1456 = vmatmul.mubr.bf16.gmra.mrb[52].mxu0 %v854_v38  ;;  %v3107_v38 = vld [vmem:[#allocation5] ss:$8 sps:$4 sm:$0xff]  }
 0x19f   : > { %1465 = vmatprep.mubr.bf16.mxu0 %v859_v12 }
 0x1a6   : > { %1466 = vmatmul.mubr.bf16.gmra.mrb[56].mxu0 %v858_v1 }
 0x1a7   : > { %1475 = vmatprep.mubr.bf16.mxu0 %v863_v22 }
 0x1ae   : > { %1476 = vmatmul.mubr.bf16.gmra.mrb[60].mxu0 %v862_v19 }
 0x249   : > { %v1407_v40 = vpop.f32.mrb[32].mxu0 }
 0x24a   : > { %v2855_v48 = vadd.f32 %v1407_v40, %v4074_v18  ;;  %v1409_v53 = vpop.f32.mrb[33].mxu0 }
 0x24b   : > { %v2856_v60 = vadd.f32 %v1409_v53, %v4077_v26  ;;  %v1411_v63 = vpop.f32.mrb[34].mxu0 }
 0x24c   : > { %3299 = vtanh.f32 %v2855_v48  ;;  %v2857_v10 = vadd.f32 %v1411_v63, %v4074_v18  ;;  %v1413_v27 = vpop.f32.mrb[35].mxu0  ;;  %v3119_v48 = vld [vmem:[#allocation5 + $0x40] ss:$8 sps:$4 sm:$0xff]   ;;  %v3124_v63 = vld [vmem:[#allocation5 + $0x54] ss:$8 sps:$4 sm:$0xff]  }
 0x24d   : > { %3301 = vtanh.f32 %v2856_v60  ;;  %v2858_v35 = vadd.f32 %v1413_v27, %v4077_v26 }
 0x24e   : > { %3303 = vtanh.f32 %v2857_v10 }
 0x24f   : > { %3305 = vtanh.f32 %v2858_v35 }
 0x251   : > { %v1417_v43 = vpop.f32.mrb[36].mxu0 }
 0x252   : > { %v2859_v51 = vadd.f32 %v1417_v43, %v4074_v18  ;;  %v1419_v55 = vpop.f32.mrb[37].mxu0 }
 0x253   : > { %v2860_v62 = vadd.f32 %v1419_v55, %v4077_v26  ;;  %v1421_v17 = vpop.f32.mrb[38].mxu0 }
 0x254   : > { %3307 = vtanh.f32 %v2859_v51  ;;  %v2861_v30 = vadd.f32 %v1421_v17, %v4074_v18  ;;  %v1423_v37 = vpop.f32.mrb[39].mxu0  ;;  %v3122_v51 = vld [vmem:[#allocation5 + $0x50] ss:$8 sps:$4 sm:$0xff]  }
 0x255   : > { %3309 = vtanh.f32 %v2860_v62  ;;  %v2862_v46 = vadd.f32 %v1423_v37, %v4077_v26  ;;  %v3127_v62 = vld [vmem:[#allocation5 + $0x64] ss:$8 sps:$4 sm:$0xff]  }
 0x256   : > { %v3300_v52 = vpop.eup %3299  ;;  %3311 = vtanh.f32 %v2861_v30 }
 0x257   : > { %v3302_v57 = vpop.eup %3301  ;;  %3313 = vtanh.f32 %v2862_v46 }
 0x258   : > { %v3304_v24 = vpop.eup %3303 }
 0x259   : > { %v3306_v25 = vpop.eup %3305  ;;  %v1427_v29 = vpop.f32.mrb[40].mxu0  ;;  %v1518_v31 = vpack.c.bf16 %v3304_v24, %v3300_v52 }
 0x25a   : > { %v2863_v32 = vadd.f32 %v1427_v29, %v4074_v18  ;;  %v1429_v34 = vpop.f32.mrb[41].mxu0  ;;  %v1519_v36 = vpack.c.bf16 %v3306_v25, %v3302_v57  ;;  %v3125_v25 = vld [vmem:[#allocation5 + $0x60] ss:$8 sps:$4 sm:$0xff]  }
 0x25b   : > { %v2864_v41 = vadd.f32 %v1429_v34, %v4077_v26  ;;  %v1431_v44 = vpop.f32.mrb[42].mxu0 }
 0x25c   : > { %3315 = vtanh.f32 %v2863_v32  ;;  %v2865_v49 = vadd.f32 %v1431_v44, %v4074_v18  ;;  %v1433_v50 = vpop.f32.mrb[43].mxu0  ;;  %1770 = vmatprep.mubr.bf16.mxu1 %v1519_v36  ;;  %v3130_v32 = vld [vmem:[#allocation5 + $0x74] ss:$8 sps:$4 sm:$0xff]   ;;  %v3128_v44 = vld [vmem:[#allocation5 + $0x70] ss:$8 sps:$4 sm:$0xff]  }
 0x25d   : > { %3317 = vtanh.f32 %v2864_v41  ;;  %v2866_v54 = vadd.f32 %v1433_v50, %v4077_v26  ;;  %1771 = vmatmul.mubr.bf16.vlgmr.msra.gmra.mrb[32].mxu1 %v1518_v31 }
 0x25e   : > { %v3308_v8 = vpop.eup %3307  ;;  %3319 = vtanh.f32 %v2865_v49  ;;  %2104 = vmatpush1.bf16.msra.mxu1 %v3107_v38  ;;  %v3133_v49 = vld [vmem:[#allocation5 + $0x84] ss:$8 sps:$4 sm:$0xff]  }
 0x25f   : > { %v3310_v56 = vpop.eup %3309  ;;  %3321 = vtanh.f32 %v2866_v54  ;;  %2105 = vmatprep.subr.bf16.mxu1 %v3112_v45 }
 0x260   : > { %v3312_v61 = vpop.eup %3311 }
 0x261   : > { %v3314_v9 = vpop.eup %3313  ;;  %v1437_v23 = vpop.f32.mrb[44].mxu0  ;;  %v1520_v2 = vpack.c.bf16 %v3312_v61, %v3308_v8 }
 0x262   : > { %v2867_v3 = vadd.f32 %v1437_v23, %v4074_v18  ;;  %v1439_v1 = vpop.f32.mrb[45].mxu0  ;;  %v1521_v4 = vpack.c.bf16 %v3314_v9, %v3310_v56  ;;  %2106 = vmatpush1.bf16.msra.mxu1 %v3110_v20  ;;  %v3131_v9 = vld [vmem:[#allocation5 + $0x80] ss:$8 sps:$4 sm:$0xff]  }
 0x263   : > { %v2868_v12 = vadd.f32 %v1439_v1, %v4077_v26  ;;  %v1441_v13 = vpop.f32.mrb[46].mxu0  ;;  %2107 = vmatprep.subr.bf16.mxu1 %v3115_v59 }
 0x264   : > { %3323 = vtanh.f32 %v2867_v3  ;;  %v2869_v16 = vadd.f32 %v1441_v13, %v4074_v18  ;;  %v1443_v19 = vpop.f32.mrb[47].mxu0  ;;  %1780 = vmatprep.mubr.bf16.mxu1 %v1521_v4  ;;  %v3136_v3 = vld [vmem:[#allocation5 + $0x94] ss:$8 sps:$4 sm:$0xff]   ;;  %v3134_v13 = vld [vmem:[#allocation5 + $0x90] ss:$8 sps:$4 sm:$0xff]  }
 0x265   : > { %3325 = vtanh.f32 %v2868_v12  ;;  %v2870_v22 = vadd.f32 %v1443_v19, %v4077_v26  ;;  %1781 = vmatmul.mubr.bf16.gmra.mrb[36].mxu1 %v1520_v2 }
 0x266   : > { %v3316_v21 = vpop.eup %3315  ;;  %3327 = vtanh.f32 %v2869_v16  ;;  %2108 = vmatpush1.bf16.msra.mxu1 %v3113_v11  ;;  %v3139_v16 = vld [vmem:[#allocation5 + $0xa4] ss:$8 sps:$4 sm:$0xff]  }
 0x267   : > { %v3318_v33 = vpop.eup %3317  ;;  %3329 = vtanh.f32 %v2870_v22  ;;  %2109 = vmatprep.subr.bf16.mxu1 %v3118_v14 }
 0x268   : > { %v3320_v42 = vpop.eup %3319 }
 0x269   : > { %v3322_v47 = vpop.eup %3321  ;;  %v1447_v58 = vpop.f32.mrb[48].mxu0  ;;  %v1522_v0 = vpack.c.bf16 %v3320_v42, %v3316_v21 }
 0x26a   : > { %v2871_v6 = vadd.f32 %v1447_v58, %v4074_v18  ;;  %v1449_v15 = vpop.f32.mrb[49].mxu0  ;;  %v1523_v40 = vpack.c.bf16 %v3322_v47, %v3318_v33  ;;  %2110 = vmatpush1.bf16.msra.mxu1 %v3116_v28  ;;  %v3137_v47 = vld [vmem:[#allocation5 + $0xa0] ss:$8 sps:$4 sm:$0xff]  }
 0x26b   : > { %v2872_v53 = vadd.f32 %v1449_v15, %v4077_v26  ;;  %v1451_v60 = vpop.f32.mrb[50].mxu0  ;;  %2111 = vmatprep.subr.bf16.mxu1 %v3121_v39 }
 0x26c   : > { %3331 = vtanh.f32 %v2871_v6  ;;  %v2873_v10 = vadd.f32 %v1451_v60, %v4074_v18  ;;  %v1453_v27 = vpop.f32.mrb[51].mxu0  ;;  %1790 = vmatprep.mubr.bf16.mxu1 %v1523_v40  ;;  %v3142_v6 = vld [vmem:[#allocation5 + $0xb4] ss:$8 sps:$4 sm:$0xff]   ;;  %v3140_v60 = vld [vmem:[#allocation5 + $0xb0] ss:$8 sps:$4 sm:$0xff]  }
 0x26d   : > { %3333 = vtanh.f32 %v2872_v53  ;;  %v2874_v35 = vadd.f32 %v1453_v27, %v4077_v26  ;;  %1791 = vmatmul.mubr.bf16.gmra.mrb[40].mxu1 %v1522_v0 }
 0x26e   : > { %v3324_v43 = vpop.eup %3323  ;;  %3335 = vtanh.f32 %v2873_v10  ;;  %2112 = vmatpush1.bf16.msra.mxu1 %v3119_v48 }
 0x26f   : > { %v3326_v55 = vpop.eup %3325  ;;  %3337 = vtanh.f32 %v2874_v35  ;;  %2113 = vmatprep.subr.bf16.mxu1 %v3124_v63 }
 0x270   : > { %v3328_v17 = vpop.eup %3327 }
 0x271   : > { %v3330_v30 = vpop.eup %3329  ;;  %v1457_v37 = vpop.f32.mrb[52].mxu0  ;;  %v1524_v46 = vpack.c.bf16 %v3328_v17, %v3324_v43 }
 0x272   : > { %v2875_v52 = vadd.f32 %v1457_v37, %v4074_v18  ;;  %v1459_v57 = vpop.f32.mrb[53].mxu0  ;;  %v1525_v24 = vpack.c.bf16 %v3330_v30, %v3326_v55  ;;  %2114 = vmatpush1.bf16.msra.mxu1 %v3122_v51  ;;  %v3145_v30 = vld [vmem:[#allocation5 + $0xc4] ss:$8 sps:$4 sm:$0xff]   ;;  %v3143_v37 = vld [vmem:[#allocation5 + $0xc0] ss:$8 sps:$4 sm:$0xff]  }
 0x273   : > { %v2876_v29 = vadd.f32 %v1459_v57, %v4077_v26  ;;  %v1461_v31 = vpop.f32.mrb[54].mxu0  ;;  %2115 = vmatprep.subr.bf16.mxu1 %v3127_v62  ;;  %v3151_v57 = vld [vmem:[#allocation5 + $0xe4] ss:$8 sps:$4 sm:$0xff]  }
 0x274   : > { %3339 = vtanh.f32 %v2875_v52  ;;  %v2877_v34 = vadd.f32 %v1461_v31, %v4074_v18  ;;  %v1463_v36 = vpop.f32.mrb[55].mxu0  ;;  %1800 = vmatprep.mubr.bf16.mxu1 %v1525_v24  ;;  %v3148_v52 = vld [vmem:[#allocation5 + $0xd4] ss:$8 sps:$4 sm:$0xff]   ;;  %v3149_v24 = vld [vmem:[#allocation5 + $0xe0] ss:$8 sps:$4 sm:$0xff]  }
 0x275   : > { %3341 = vtanh.f32 %v2876_v29  ;;  %v2878_v38 = vadd.f32 %v1463_v36, %v4077_v26  ;;  %1801 = vmatmul.mubr.bf16.gmra.mrb[44].mxu1 %v1524_v46  ;;  %v3146_v46 = vld [vmem:[#allocation5 + $0xd0] ss:$8 sps:$4 sm:$0xff]   ;;  %v3154_v29 = vld [vmem:[#allocation5 + $0xf4] ss:$8 sps:$4 sm:$0xff]   ;;  %v4123_v36 = vld [vmem:[%s4322_s9 + $0x8] sm:$0xff]  }
 0x276   : > { %v3332_v41 = vpop.eup %3331  ;;  %3343 = vtanh.f32 %v2877_v34  ;;  %2116 = vmatpush1.bf16.msra.mxu1 %v3125_v25  ;;  %v3152_v25 = vld [vmem:[#allocation5 + $0xf0] ss:$8 sps:$4 sm:$0xff]   ;;  %v3155_v31 = vld [vmem:[%s4322_s9 + $0x40] sm:$0xff]   ;;  %v3157_v34 = vld [vmem:[%s4322_s9 + $0x48] sm:$0xff]  }
 0x277   : > { %v3334_v45 = vpop.eup %3333  ;;  %3345 = vtanh.f32 %v2878_v38  ;;  %2117 = vmatprep.subr.bf16.mxu1 %v3130_v32  ;;  %v3156_v32 = vld [vmem:[%s4322_s9] sm:$0xff]   ;;  %2775 = vmatprep.subr.bf16.mxu0 %v3155_v31  ;;  %v4128_v38 = vld [vmem:[%s4322_s9 + $0x50] sm:$0xff]  }
 0x278   : > { %v3336_v50 = vpop.eup %3335  ;;  %2776 = vmatpush3.bf16.msra.mxu0 %v3156_v32 }
 0x279   : > { %v3338_v54 = vpop.eup %3337  ;;  %v1467_v8 = vpop.f32.mrb[56].mxu0  ;;  %v1526_v20 = vpack.c.bf16 %v3336_v50, %v3332_v41  ;;  %2777 = vmatprep.subr.bf16.mxu0 %v3157_v34  ;;  %v4134_v41 = vld [vmem:[%s4322_s9 + $0x10] sm:$0xff]  }
 0x27a   : > { %v2879_v56 = vadd.f32 %v1467_v8, %v4074_v18  ;;  %v1469_v59 = vpop.f32.mrb[57].mxu0  ;;  %v1527_v61 = vpack.c.bf16 %v3338_v54, %v3334_v45  ;;  %2118 = vmatpush1.bf16.msra.mxu1 %v3128_v44  ;;  %v1566_v44 = vld [vmem:[%s4319_s6] sm:$0x3] }
 0x27b   : > { %v2880_v23 = vadd.f32 %v1469_v59, %v4077_v26  ;;  %v1471_v2 = vpop.f32.mrb[58].mxu0  ;;  %2119 = vmatprep.subr.bf16.mxu1 %v3133_v49  ;;  %v4142_v45 = vrot.slane %v1566_v44, %v3800_v5  ;;  %v4145_v49 = vrot.slane %v1566_v44, %v3805_v7 }
 0x27c   : > { %3347 = vtanh.f32 %v2879_v56  ;;  %v2881_v1 = vadd.f32 %v1471_v2, %v4074_v18  ;;  %v1473_v4 = vpop.f32.mrb[59].mxu0  ;;  %1810 = vmatprep.mubr.bf16.mxu1 %v1527_v61  ;;  %2778 = vmatpush3.bf16.msra.mxu0 %v4123_v36 }
 0x27d   : > { %3349 = vtanh.f32 %v2880_v23  ;;  %v2882_v11 = vadd.f32 %v1473_v4, %v4077_v26  ;;  %1811 = vmatmul.mubr.bf16.gmra.mrb[48].mxu1 %v1526_v20  ;;  %2779 = vmatprep.subr.bf16.mxu0 %v4128_v38 }
 0x27e   : > { %v3340_v12 = vpop.eup %3339  ;;  %3351 = vtanh.f32 %v2881_v1  ;;  %2120 = vmatpush1.bf16.msra.mxu1 %v3131_v9 }
 0x27f   : > { %v3342_v14 = vpop.eup %3341  ;;  %3353 = vtanh.f32 %v2882_v11  ;;  %2121 = vmatprep.subr.bf16.mxu1 %v3136_v3 }
 0x280   : > { %v3344_v19 = vpop.eup %3343  ;;  %2780 = vmatpush3.bf16.msra.mxu0 %v4134_v41 }
 0x281   : > { %v3346_v22 = vpop.eup %3345  ;;  %v1477_v21 = vpop.f32.mrb[60].mxu0  ;;  %v1528_v28 = vpack.c.bf16 %v3344_v19, %v3340_v12 }
 0x282   : > { %v2883_v33 = vadd.f32 %v1477_v21, %v4074_v18  ;;  %v1479_v39 = vpop.f32.mrb[61].mxu0  ;;  %v1529_v42 = vpack.c.bf16 %v3346_v22, %v3342_v14  ;;  %2122 = vmatpush1.bf16.msra.mxu1 %v3134_v13 }
 0x283   : > { %v2884_v58 = vadd.f32 %v1479_v39, %v4077_v26  ;;  %v1481_v0 = vpop.f32.mrb[62].mxu0  ;;  %2123 = vmatprep.subr.bf16.mxu1 %v3139_v16 }
 0x284   : > { %3355 = vtanh.f32 %v2883_v33  ;;  %v2885_v15 = vadd.f32 %v1481_v0, %v4074_v18  ;;  %v1483_v40 = vpop.f32.mrb[63].mxu0  ;;  %1820 = vmatprep.mubr.bf16.mxu1 %v1529_v42 }
 0x285   : > { %3357 = vtanh.f32 %v2884_v58  ;;  %v2886_v48 = vadd.f32 %v1483_v40, %v4077_v26  ;;  %1821 = vmatmul.mubr.bf16.gmra.mrb[52].mxu1 %v1528_v28 }
 0x286   : > { %v3348_v53 = vpop.eup %3347  ;;  %3359 = vtanh.f32 %v2885_v15  ;;  %2124 = vmatpush1.bf16.msra.mxu1 %v3137_v47 }
 0x287   : > { %v3350_v63 = vpop.eup %3349  ;;  %3361 = vtanh.f32 %v2886_v48  ;;  %2125 = vmatprep.subr.bf16.mxu1 %v3142_v6 }
 0x288   : > { %v3352_v10 = vpop.eup %3351 }
 0x289   : > { %v3354_v27 = vpop.eup %3353  ;;  %v1530_v35 = vpack.c.bf16 %v3352_v10, %v3348_v53 }
 0x28a   : > { %v1531_v43 = vpack.c.bf16 %v3354_v27, %v3350_v63  ;;  %2126 = vmatpush1.bf16.msra.mxu1 %v3140_v60 }
 0x28b   : > { %2127 = vmatprep.subr.bf16.mxu1 %v3145_v30 }
 0x28c   : > { %1830 = vmatprep.mubr.bf16.mxu1 %v1531_v43 }
 0x28d   : > { %1831 = vmatmul.mubr.bf16.gmra.mrb[56].mxu1 %v1530_v35 }
 0x28e   : > { %v3356_v18 = vpop.eup %3355  ;;  %2128 = vmatpush1.bf16.msra.mxu1 %v3143_v37 }
 0x28f   : > { %v3358_v51 = vpop.eup %3357  ;;  %2129 = vmatprep.subr.bf16.mxu1 %v3148_v52 }
 0x290   : > { %v3360_v55 = vpop.eup %3359 }
 0x291   : > { %v3362_v62 = vpop.eup %3361  ;;  %v1532_v26 = vpack.c.bf16 %v3360_v55, %v3356_v18 }
 0x292   : > { %v1533_v17 = vpack.c.bf16 %v3362_v62, %v3358_v51  ;;  %2130 = vmatpush1.bf16.msra.mxu1 %v3146_v46 }
 0x293   : > { %2131 = vmatprep.subr.bf16.mxu1 %v3151_v57 }
 0x294   : > { %1840 = vmatprep.mubr.bf16.mxu1 %v1533_v17 }
 0x295   : > { %1841 = vmatmul.mubr.bf16.gmra.mrb[60].mxu1 %v1532_v26 }
 0x296   : > { %2132 = vmatpush1.bf16.msra.mxu1 %v3149_v24 }
 0x297   : > { %2133 = vmatprep.subr.bf16.mxu1 %v3154_v29 }
 0x29a   : > { %2134 = vmatpush1.bf16.msra.mxu1 %v3152_v25 }
 0x29b   : > { %2839 = vmatprep.subr.bf16.mxu1 %v3155_v31 }
 0x330   : > { %v1772_v50 = vpop.f32.mrb[32].mxu1 }
 0x331   : > { %v1773_v54 = vadd.f32 %v1772_v50, %v4142_v45  ;;  %v1774_v8 = vpop.f32.mrb[33].mxu1 }
 0x332   : > { %v1775_v20 = vadd.f32 %v1774_v8, %v4145_v49  ;;  %v1776_v56 = vpop.f32.mrb[34].mxu1 }
 0x333   : > { %3363 = vtanh.f32 %v1773_v54  ;;  %v1777_v59 = vadd.f32 %v1776_v56, %v4142_v45  ;;  %v1778_v61 = vpop.f32.mrb[35].mxu1 }
 0x334   : > { %3365 = vtanh.f32 %v1775_v20  ;;  %v1779_v9 = vadd.f32 %v1778_v61, %v4145_v49 }
 0x335   : > { %3367 = vtanh.f32 %v1777_v59 }
 0x336   : > { %3369 = vtanh.f32 %v1779_v9 }
 0x338   : > { %v1782_v23 = vpop.f32.mrb[36].mxu1 }
 0x339   : > { %v1783_v2 = vadd.f32 %v1782_v23, %v4142_v45  ;;  %v1784_v3 = vpop.f32.mrb[37].mxu1 }
 0x33a   : > { %v1785_v1 = vadd.f32 %v1784_v3, %v4145_v49  ;;  %v1786_v4 = vpop.f32.mrb[38].mxu1 }
 0x33b   : > { %3371 = vtanh.f32 %v1783_v2  ;;  %v1787_v11 = vadd.f32 %v1786_v4, %v4142_v45  ;;  %v1788_v12 = vpop.f32.mrb[39].mxu1 }
 0x33c   : > { %3373 = vtanh.f32 %v1785_v1  ;;  %v1789_v13 = vadd.f32 %v1788_v12, %v4145_v49 }
 0x33d   : > { %v3364_v14 = vpop.eup %3363  ;;  %3375 = vtanh.f32 %v1787_v11 }
 0x33e   : > { %v3366_v16 = vpop.eup %3365  ;;  %3377 = vtanh.f32 %v1789_v13 }
 0x33f   : > { %v3368_v19 = vpop.eup %3367 }
 0x340   : > { %v3370_v22 = vpop.eup %3369  ;;  %v1792_v21 = vpop.f32.mrb[40].mxu1  ;;  %v1883_v28 = vpack.c.bf16 %v3368_v19, %v3364_v14 }
 0x341   : > { %v1793_v33 = vadd.f32 %v1792_v21, %v4142_v45  ;;  %v1794_v39 = vpop.f32.mrb[41].mxu1  ;;  %v1884_v42 = vpack.c.bf16 %v3370_v22, %v3366_v16 }
 0x342   : > { %v1795_v47 = vadd.f32 %v1794_v39, %v4145_v49  ;;  %v1796_v58 = vpop.f32.mrb[42].mxu1 }
 0x343   : > { %3379 = vtanh.f32 %v1793_v33  ;;  %v1797_v0 = vadd.f32 %v1796_v58, %v4142_v45  ;;  %v1798_v6 = vpop.f32.mrb[43].mxu1  ;;  %2135 = vmatprep.mubr.bf16.mxu1 %v1884_v42 }
 0x344   : > { %3381 = vtanh.f32 %v1795_v47  ;;  %v1799_v15 = vadd.f32 %v1798_v6, %v4145_v49  ;;  %2136 = vmatmul.mubr.bf16.vlgmr.msra.gmra.mrb[64].mxu1 %v1883_v28 }
 0x345   : > { %v3372_v40 = vpop.eup %3371  ;;  %3383 = vtanh.f32 %v1797_v0  ;;  %2847 = vmatpush3.bf16.msra.mxu1 %v3156_v32 }
 0x346   : > { %v3374_v48 = vpop.eup %3373  ;;  %3385 = vtanh.f32 %v1799_v15  ;;  %2840 = vmatprep.subr.bf16.mxu1 %v3157_v34 }
 0x347   : > { %v3376_v53 = vpop.eup %3375 }
 0x348   : > { %v3378_v60 = vpop.eup %3377  ;;  %v1802_v63 = vpop.f32.mrb[44].mxu1  ;;  %v1885_v10 = vpack.c.bf16 %v3376_v53, %v3372_v40 }
 0x349   : > { %v1803_v27 = vadd.f32 %v1802_v63, %v4142_v45  ;;  %v1804_v35 = vpop.f32.mrb[45].mxu1  ;;  %v1886_v43 = vpack.c.bf16 %v3378_v60, %v3374_v48  ;;  %2848 = vmatpush3.bf16.msra.mxu1 %v4123_v36 }
 0x34a   : > { %v1805_v18 = vadd.f32 %v1804_v35, %v4145_v49  ;;  %v1806_v51 = vpop.f32.mrb[46].mxu1  ;;  %2841 = vmatprep.subr.bf16.mxu1 %v4128_v38 }
 0x34b   : > { %3387 = vtanh.f32 %v1803_v27  ;;  %v1807_v55 = vadd.f32 %v1806_v51, %v4142_v45  ;;  %v1808_v62 = vpop.f32.mrb[47].mxu1  ;;  %2145 = vmatprep.mubr.bf16.mxu1 %v1886_v43 }
 0x34c   : > { %3389 = vtanh.f32 %v1805_v18  ;;  %v1809_v26 = vadd.f32 %v1808_v62, %v4145_v49  ;;  %2146 = vmatmul.mubr.bf16.gmra.mrb[68].mxu1 %v1885_v10 }
 0x34d   : > { %v3380_v17 = vpop.eup %3379  ;;  %3391 = vtanh.f32 %v1807_v55  ;;  %2849 = vmatpush3.bf16.msra.mxu1 %v4134_v41 }
 0x34e   : > { %v3382_v30 = vpop.eup %3381  ;;  %3393 = vtanh.f32 %v1809_v26 }
 0x34f   : > { %v3384_v37 = vpop.eup %3383 }
 0x350   : > { %v3386_v46 = vpop.eup %3385  ;;  %v1812_v52 = vpop.f32.mrb[48].mxu1  ;;  %v1887_v57 = vpack.c.bf16 %v3384_v37, %v3380_v17 }
 0x351   : > { %v1813_v24 = vadd.f32 %v1812_v52, %v4142_v45  ;;  %v1814_v25 = vpop.f32.mrb[49].mxu1  ;;  %v1888_v29 = vpack.c.bf16 %v3386_v46, %v3382_v30 }
 0x352   : > { %v1815_v31 = vadd.f32 %v1814_v25, %v4145_v49  ;;  %v1816_v32 = vpop.f32.mrb[50].mxu1  ;;  %v3162_v25 = vld [vmem:[%s4322_s9 + $0x18] sm:$0xff]  }
 0x353   : > { %3395 = vtanh.f32 %v1813_v24  ;;  %v1817_v34 = vadd.f32 %v1816_v32, %v4142_v45  ;;  %v1818_v36 = vpop.f32.mrb[51].mxu1  ;;  %2155 = vmatprep.mubr.bf16.mxu1 %v1888_v29  ;;  %v3163_v29 = vld [vmem:[%s4322_s9 + $0x60] sm:$0xff]   ;;  %v3165_v32 = vld [vmem:[%s4322_s9 + $0x68] sm:$0xff]  }
 0x354   : > { %3397 = vtanh.f32 %v1815_v31  ;;  %v1819_v38 = vadd.f32 %v1818_v36, %v4145_v49  ;;  %2156 = vmatmul.mubr.bf16.gmra.mrb[72].mxu1 %v1887_v57  ;;  %v3164_v31 = vld [vmem:[%s4322_s9 + $0x20] sm:$0xff]   ;;  %v3167_v36 = vld [vmem:[%s4322_s9 + $0x70] sm:$0xff]  }
 0x355   : > { %v3388_v41 = vpop.eup %3387  ;;  %3399 = vtanh.f32 %v1817_v34  ;;  %v3166_v34 = vld [vmem:[%s4322_s9 + $0x28] sm:$0xff]  }
 0x356   : > { %v3390_v44 = vpop.eup %3389  ;;  %3401 = vtanh.f32 %v1819_v38  ;;  %v3168_v38 = vld [vmem:[%s4322_s9 + $0x30] sm:$0xff]  }
 0x357   : > { %v3392_v50 = vpop.eup %3391 }
 0x358   : > { %v3394_v54 = vpop.eup %3393  ;;  %v1822_v8 = vpop.f32.mrb[52].mxu1  ;;  %v1889_v20 = vpack.c.bf16 %v3392_v50, %v3388_v41  ;;  %v3169_v41 = vld [vmem:[%s4322_s9 + $0x78] sm:$0xff]   ;;  %v1931_v50 = vld [vmem:[%s4321_s8] sm:$0x3] }
 0x359   : > { %v1823_v56 = vadd.f32 %v1822_v8, %v4142_v45  ;;  %v1824_v59 = vpop.f32.mrb[53].mxu1  ;;  %v1890_v61 = vpack.c.bf16 %v3394_v54, %v3390_v44  ;;  %v3170_v44 = vld [vmem:[%s4322_s9 + $0x38] sm:$0xff]   ;;  %v4216_v54 = vrot.slane %v1931_v50, %v3800_v5  ;;  %v4219_v8 = vrot.slane %v1931_v50, %v3805_v7 }
 0x35a   : > { %v1825_v9 = vadd.f32 %v1824_v59, %v4145_v49  ;;  %v1826_v23 = vpop.f32.mrb[54].mxu1 }
 0x35b   : > { %3403 = vtanh.f32 %v1823_v56  ;;  %v1827_v2 = vadd.f32 %v1826_v23, %v4142_v45  ;;  %v1828_v3 = vpop.f32.mrb[55].mxu1  ;;  %2165 = vmatprep.mubr.bf16.mxu1 %v1890_v61 }
 0x35c   : > { %3405 = vtanh.f32 %v1825_v9  ;;  %v1829_v1 = vadd.f32 %v1828_v3, %v4145_v49  ;;  %2166 = vmatmul.mubr.bf16.gmra.mrb[76].mxu1 %v1889_v20 }
 0x35d   : > { %v3396_v4 = vpop.eup %3395  ;;  %3407 = vtanh.f32 %v1827_v2 }
 0x35e   : > { %v3398_v11 = vpop.eup %3397  ;;  %3409 = vtanh.f32 %v1829_v1 }
 0x35f   : > { %v3400_v12 = vpop.eup %3399 }
 0x360   : > { %v3402_v13 = vpop.eup %3401  ;;  %v1832_v14 = vpop.f32.mrb[56].mxu1  ;;  %v1891_v16 = vpack.c.bf16 %v3400_v12, %v3396_v4 }
 0x361   : > { %v1833_v19 = vadd.f32 %v1832_v14, %v4142_v45  ;;  %v1834_v22 = vpop.f32.mrb[57].mxu1  ;;  %v1892_v21 = vpack.c.bf16 %v3402_v13, %v3398_v11 }
 0x362   : > { %v1835_v28 = vadd.f32 %v1834_v22, %v4145_v49  ;;  %v1836_v33 = vpop.f32.mrb[58].mxu1 }
 0x363   : > { %3411 = vtanh.f32 %v1833_v19  ;;  %v1837_v39 = vadd.f32 %v1836_v33, %v4142_v45  ;;  %v1838_v42 = vpop.f32.mrb[59].mxu1  ;;  %2175 = vmatprep.mubr.bf16.mxu1 %v1892_v21 }
 0x364   : > { %3413 = vtanh.f32 %v1835_v28  ;;  %v1839_v47 = vadd.f32 %v1838_v42, %v4145_v49  ;;  %2176 = vmatmul.mubr.bf16.gmra.mrb[80].mxu1 %v1891_v16 }
 0x365   : > { %v3404_v58 = vpop.eup %3403  ;;  %3415 = vtanh.f32 %v1837_v39 }
 0x366   : > { %v3406_v0 = vpop.eup %3405  ;;  %3417 = vtanh.f32 %v1839_v47 }
 0x367   : > { %v3408_v6 = vpop.eup %3407 }
 0x368   : > { %v3410_v15 = vpop.eup %3409  ;;  %v1842_v40 = vpop.f32.mrb[60].mxu1  ;;  %v1893_v48 = vpack.c.bf16 %v3408_v6, %v3404_v58 }
 0x369   : > { %v1843_v53 = vadd.f32 %v1842_v40, %v4142_v45  ;;  %v1844_v60 = vpop.f32.mrb[61].mxu1  ;;  %v1894_v63 = vpack.c.bf16 %v3410_v15, %v3406_v0 }
 0x36a   : > { %v1845_v10 = vadd.f32 %v1844_v60, %v4145_v49  ;;  %v1846_v27 = vpop.f32.mrb[62].mxu1 }
 0x36b   : > { %3419 = vtanh.f32 %v1843_v53  ;;  %v1847_v35 = vadd.f32 %v1846_v27, %v4142_v45  ;;  %v1848_v43 = vpop.f32.mrb[63].mxu1  ;;  %2185 = vmatprep.mubr.bf16.mxu1 %v1894_v63 }
 0x36c   : > { %3421 = vtanh.f32 %v1845_v10  ;;  %v1849_v18 = vadd.f32 %v1848_v43, %v4145_v49  ;;  %2186 = vmatmul.mubr.bf16.gmra.mrb[84].mxu1 %v1893_v48  ;;  %v3161_v49 = vld [vmem:[%s4322_s9 + $0x58] sm:$0xff]  }
 0x36d   : > { %v3412_v51 = vpop.eup %3411  ;;  %3423 = vtanh.f32 %v1847_v35  ;;  %2781 = vmatprep.subr.bf16.mxu0 %v3161_v49  ;;  %2842 = vmatprep.subr.bf16.mxu1 %v3161_v49 }
 0x36e   : > { %v3414_v55 = vpop.eup %3413  ;;  %3425 = vtanh.f32 %v1849_v18  ;;  %2782 = vmatpush3.bf16.msra.mxu0 %v3162_v25  ;;  %2850 = vmatpush3.bf16.msra.mxu1 %v3162_v25 }
 0x36f   : > { %v3416_v62 = vpop.eup %3415  ;;  %2783 = vmatprep.subr.bf16.mxu0 %v3163_v29  ;;  %2843 = vmatprep.subr.bf16.mxu1 %v3163_v29 }
 0x370   : > { %v3418_v26 = vpop.eup %3417  ;;  %v1895_v17 = vpack.c.bf16 %v3416_v62, %v3412_v51 }
 0x371   : > { %v1896_v30 = vpack.c.bf16 %v3418_v26, %v3414_v55 }
 0x372   : > { %2784 = vmatpush3.bf16.msra.mxu0 %v3164_v31  ;;  %2851 = vmatpush3.bf16.msra.mxu1 %v3164_v31 }
 0x373   : > { %2195 = vmatprep.mubr.bf16.mxu1 %v1896_v30  ;;  %2785 = vmatprep.subr.bf16.mxu0 %v3165_v32 }
 0x374   : > { %2196 = vmatmul.mubr.bf16.gmra.mrb[88].mxu1 %v1895_v17  ;;  %2844 = vmatprep.subr.bf16.mxu1 %v3165_v32 }
 0x375   : > { %v3420_v37 = vpop.eup %3419 }
 0x376   : > { %v3422_v46 = vpop.eup %3421  ;;  %2786 = vmatpush3.bf16.msra.mxu0 %v3166_v34  ;;  %2852 = vmatpush3.bf16.msra.mxu1 %v3166_v34 }
 0x377   : > { %v3424_v52 = vpop.eup %3423  ;;  %2787 = vmatprep.subr.bf16.mxu0 %v3167_v36  ;;  %2845 = vmatprep.subr.bf16.mxu1 %v3167_v36 }
 0x378   : > { %v3426_v45 = vpop.eup %3425  ;;  %v1897_v57 = vpack.c.bf16 %v3424_v52, %v3420_v37 }
 0x379   : > { %v1898_v24 = vpack.c.bf16 %v3426_v45, %v3422_v46 }
 0x37a   : > { %2788 = vmatpush3.bf16.msra.mxu0 %v3168_v38  ;;  %2853 = vmatpush3.bf16.msra.mxu1 %v3168_v38 }
 0x37b   : > { %2205 = vmatprep.mubr.bf16.mxu1 %v1898_v24  ;;  %2789 = vmatprep.subr.bf16.mxu0 %v3169_v41 }
 0x37c   : > { %2206 = vmatmul.mubr.bf16.gmra.mrb[92].mxu1 %v1897_v57  ;;  %2846 = vmatprep.subr.bf16.mxu1 %v3169_v41 }
 0x37e   : > { %2790 = vmatpush3.bf16.msra.mxu0 %v3170_v44  ;;  %2854 = vmatpush3.bf16.msra.mxu1 %v3170_v44 }
 0x417   : > { %v2137_v20 = vpop.f32.mrb[64].mxu1 }
 0x418   : > { %v2138_v56 = vadd.f32 %v2137_v20, %v4216_v54  ;;  %v2139_v59 = vpop.f32.mrb[65].mxu1 }
 0x419   : > { %v2140_v61 = vadd.f32 %v2139_v59, %v4219_v8  ;;  %v2141_v9 = vpop.f32.mrb[66].mxu1 }
 0x41a   : > { %3427 = vtanh.f32 %v2138_v56  ;;  %v2142_v23 = vadd.f32 %v2141_v9, %v4216_v54  ;;  %v2143_v2 = vpop.f32.mrb[67].mxu1 }
 0x41b   : > { %3429 = vtanh.f32 %v2140_v61  ;;  %v2144_v3 = vadd.f32 %v2143_v2, %v4219_v8 }
 0x41c   : > { %3431 = vtanh.f32 %v2142_v23 }
 0x41d   : > { %3433 = vtanh.f32 %v2144_v3 }
 0x41f   : > { %v2147_v5 = vpop.f32.mrb[68].mxu1 }
 0x420   : > { %v2148_v7 = vadd.f32 %v2147_v5, %v4216_v54  ;;  %v2149_v1 = vpop.f32.mrb[69].mxu1 }
 0x421   : > { %v2150_v4 = vadd.f32 %v2149_v1, %v4219_v8  ;;  %v2151_v11 = vpop.f32.mrb[70].mxu1 }
 0x422   : > { %3435 = vtanh.f32 %v2148_v7  ;;  %v2152_v12 = vadd.f32 %v2151_v11, %v4216_v54  ;;  %v2153_v13 = vpop.f32.mrb[71].mxu1 }
 0x423   : > { %3437 = vtanh.f32 %v2150_v4  ;;  %v2154_v14 = vadd.f32 %v2153_v13, %v4219_v8 }
 0x424   : > { %v3428_v16 = vpop.eup %3427  ;;  %3439 = vtanh.f32 %v2152_v12 }
 0x425   : > { %v3430_v19 = vpop.eup %3429  ;;  %3441 = vtanh.f32 %v2154_v14 }
 0x426   : > { %v3432_v22 = vpop.eup %3431 }
 0x427   : > { %v3434_v21 = vpop.eup %3433  ;;  %v2157_v28 = vpop.f32.mrb[72].mxu1  ;;  %v2248_v33 = vpack.c.bf16 %v3432_v22, %v3428_v16 }
 0x428   : > { %v2158_v39 = vadd.f32 %v2157_v28, %v4216_v54  ;;  %v2159_v42 = vpop.f32.mrb[73].mxu1  ;;  %v2249_v47 = vpack.c.bf16 %v3434_v21, %v3430_v19 }
 0x429   : > { %v2160_v58 = vadd.f32 %v2159_v42, %v4219_v8  ;;  %v2161_v0 = vpop.f32.mrb[74].mxu1 }
 0x42a   : > { %3443 = vtanh.f32 %v2158_v39  ;;  %v2162_v6 = vadd.f32 %v2161_v0, %v4216_v54  ;;  %v2163_v15 = vpop.f32.mrb[75].mxu1  ;;  %2431 = vmatprep.mubr.bf16.mxu0 %v2249_v47 }
 0x42b   : > { %3445 = vtanh.f32 %v2160_v58  ;;  %v2164_v40 = vadd.f32 %v2163_v15, %v4219_v8  ;;  %2432 = vmatmul.mubr.bf16.vlgmr.msra.gmra.mrb[64].mxu0 %v2248_v33 }
 0x42c   : > { %v3436_v48 = vpop.eup %3435  ;;  %3447 = vtanh.f32 %v2162_v6 }
 0x42d   : > { %v3438_v53 = vpop.eup %3437  ;;  %3449 = vtanh.f32 %v2164_v40 }
 0x42e   : > { %v3440_v60 = vpop.eup %3439 }
 0x42f   : > { %v3442_v63 = vpop.eup %3441  ;;  %v2167_v10 = vpop.f32.mrb[76].mxu1  ;;  %v2250_v27 = vpack.c.bf16 %v3440_v60, %v3436_v48 }
 0x430   : > { %v2168_v35 = vadd.f32 %v2167_v10, %v4216_v54  ;;  %v2169_v43 = vpop.f32.mrb[77].mxu1  ;;  %v2251_v18 = vpack.c.bf16 %v3442_v63, %v3438_v53 }
 0x431   : > { %v2170_v51 = vadd.f32 %v2169_v43, %v4219_v8  ;;  %v2171_v55 = vpop.f32.mrb[78].mxu1 }
 0x432   : > { %3451 = vtanh.f32 %v2168_v35  ;;  %v2172_v62 = vadd.f32 %v2171_v55, %v4216_v54  ;;  %v2173_v26 = vpop.f32.mrb[79].mxu1  ;;  %2439 = vmatprep.mubr.bf16.mxu0 %v2251_v18 }
 0x433   : > { %3453 = vtanh.f32 %v2170_v51  ;;  %v2174_v17 = vadd.f32 %v2173_v26, %v4219_v8  ;;  %2440 = vmatmul.mubr.bf16.gmra.mrb[68].mxu0 %v2250_v27 }
 0x434   : > { %v3444_v30 = vpop.eup %3443  ;;  %3455 = vtanh.f32 %v2172_v62 }
 0x435   : > { %v3446_v37 = vpop.eup %3445  ;;  %3457 = vtanh.f32 %v2174_v17 }
 0x436   : > { %v3448_v46 = vpop.eup %3447 }
 0x437   : > { %v3450_v52 = vpop.eup %3449  ;;  %v2177_v45 = vpop.f32.mrb[80].mxu1  ;;  %v2252_v57 = vpack.c.bf16 %v3448_v46, %v3444_v30 }
 0x438   : > { %v2178_v24 = vadd.f32 %v2177_v45, %v4216_v54  ;;  %v2179_v49 = vpop.f32.mrb[81].mxu1  ;;  %v2253_v25 = vpack.c.bf16 %v3450_v52, %v3446_v37 }
 0x439   : > { %v2180_v29 = vadd.f32 %v2179_v49, %v4219_v8  ;;  %v2181_v31 = vpop.f32.mrb[82].mxu1 }
 0x43a   : > { %3459 = vtanh.f32 %v2178_v24  ;;  %v2182_v32 = vadd.f32 %v2181_v31, %v4216_v54  ;;  %v2183_v34 = vpop.f32.mrb[83].mxu1  ;;  %2447 = vmatprep.mubr.bf16.mxu0 %v2253_v25 }
 0x43b   : > { %3461 = vtanh.f32 %v2180_v29  ;;  %v2184_v36 = vadd.f32 %v2183_v34, %v4219_v8  ;;  %2448 = vmatmul.mubr.bf16.gmra.mrb[72].mxu0 %v2252_v57  ;;  %v4253_v57 = vld [vmem:[#allocation2] ss:$0 sm:$0xff] }
 0x43c   : > { %v3452_v38 = vpop.eup %3451  ;;  %3463 = vtanh.f32 %v2182_v32 }
 0x43d   : > { %v3454_v41 = vpop.eup %3453  ;;  %3465 = vtanh.f32 %v2184_v36 }
 0x43e   : > { %v3456_v44 = vpop.eup %3455 }
 0x43f   : > { %v3458_v50 = vpop.eup %3457  ;;  %v2187_v20 = vpop.f32.mrb[84].mxu1  ;;  %v2254_v56 = vpack.c.bf16 %v3456_v44, %v3452_v38 }
 0x440   : > { %v2188_v59 = vadd.f32 %v2187_v20, %v4216_v54  ;;  %v2189_v61 = vpop.f32.mrb[85].mxu1  ;;  %v2255_v9 = vpack.c.bf16 %v3458_v50, %v3454_v41 }
 0x441   : > { %v2190_v23 = vadd.f32 %v2189_v61, %v4219_v8  ;;  %v2191_v2 = vpop.f32.mrb[86].mxu1 }
 0x442   : > { %3467 = vtanh.f32 %v2188_v59  ;;  %v2192_v3 = vadd.f32 %v2191_v2, %v4216_v54  ;;  %v2193_v5 = vpop.f32.mrb[87].mxu1  ;;  %2455 = vmatprep.mubr.bf16.mxu0 %v2255_v9 }
 0x443   : > { %3469 = vtanh.f32 %v2190_v23  ;;  %v2194_v7 = vadd.f32 %v2193_v5, %v4219_v8  ;;  %2456 = vmatmul.mubr.bf16.gmra.mrb[76].mxu0 %v2254_v56 }
 0x444   : > { %v3460_v1 = vpop.eup %3459  ;;  %3471 = vtanh.f32 %v2192_v3 }
 0x445   : > { %v3462_v4 = vpop.eup %3461  ;;  %3473 = vtanh.f32 %v2194_v7 }
 0x446   : > { %v3464_v11 = vpop.eup %3463 }
 0x447   : > { %v3466_v12 = vpop.eup %3465  ;;  %v2197_v13 = vpop.f32.mrb[88].mxu1  ;;  %v2256_v14 = vpack.c.bf16 %v3464_v11, %v3460_v1 }
 0x448   : > { %v2198_v16 = vadd.f32 %v2197_v13, %v4216_v54  ;;  %v2199_v19 = vpop.f32.mrb[89].mxu1  ;;  %v2257_v22 = vpack.c.bf16 %v3466_v12, %v3462_v4 }
 0x449   : > { %v2200_v21 = vadd.f32 %v2199_v19, %v4219_v8  ;;  %v2201_v28 = vpop.f32.mrb[90].mxu1 }
 0x44a   : > { %3475 = vtanh.f32 %v2198_v16  ;;  %v2202_v33 = vadd.f32 %v2201_v28, %v4216_v54  ;;  %v2203_v39 = vpop.f32.mrb[91].mxu1  ;;  %2463 = vmatprep.mubr.bf16.mxu1 %v2257_v22 }
 0x44b   : > { %3477 = vtanh.f32 %v2200_v21  ;;  %v2204_v42 = vadd.f32 %v2203_v39, %v4219_v8  ;;  %2464 = vmatmul.mubr.bf16.vlgmr.msra.gmra.mrb[96].mxu1 %v2256_v14 }
 0x44c   : > { %v3468_v47 = vpop.eup %3467  ;;  %3479 = vtanh.f32 %v2202_v33 }
 0x44d   : > { %v3470_v58 = vpop.eup %3469  ;;  %3481 = vtanh.f32 %v2204_v42 }
 0x44e   : > { %v3472_v0 = vpop.eup %3471 }
 0x44f   : > { %v3474_v6 = vpop.eup %3473  ;;  %v2207_v15 = vpop.f32.mrb[92].mxu1  ;;  %v2258_v40 = vpack.c.bf16 %v3472_v0, %v3468_v47 }
 0x450   : > { %v2208_v48 = vadd.f32 %v2207_v15, %v4216_v54  ;;  %v2209_v53 = vpop.f32.mrb[93].mxu1  ;;  %v2259_v60 = vpack.c.bf16 %v3474_v6, %v3470_v58 }
 0x451   : > { %v2210_v63 = vadd.f32 %v2209_v53, %v4219_v8  ;;  %v2211_v10 = vpop.f32.mrb[94].mxu1 }
 0x452   : > { %3483 = vtanh.f32 %v2208_v48  ;;  %v2212_v27 = vadd.f32 %v2211_v10, %v4216_v54  ;;  %v2213_v35 = vpop.f32.mrb[95].mxu1  ;;  %2471 = vmatprep.mubr.bf16.mxu1 %v2259_v60 }
 0x453   : > { %3485 = vtanh.f32 %v2210_v63  ;;  %v2214_v43 = vadd.f32 %v2213_v35, %v4219_v8  ;;  %2472 = vmatmul.mubr.bf16.gmra.mrb[100].mxu1 %v2258_v40 }
 0x454   : > { %v3476_v18 = vpop.eup %3475  ;;  %3487 = vtanh.f32 %v2212_v27 }
 0x455   : > { %v3478_v51 = vpop.eup %3477  ;;  %3489 = vtanh.f32 %v2214_v43 }
 0x456   : > { %v3480_v55 = vpop.eup %3479 }
 0x457   : > { %v3482_v62 = vpop.eup %3481  ;;  %v2260_v26 = vpack.c.bf16 %v3480_v55, %v3476_v18 }
 0x458   : > { %v2261_v17 = vpack.c.bf16 %v3482_v62, %v3478_v51 }
 0x45a   : > { %2479 = vmatprep.mubr.bf16.mxu1 %v2261_v17 }
 0x45b   : > { %2480 = vmatmul.mubr.bf16.gmra.mrb[104].mxu1 %v2260_v26 }
 0x45c   : > { %v3484_v30 = vpop.eup %3483 }
 0x45d   : > { %v3486_v37 = vpop.eup %3485 }
 0x45e   : > { %v3488_v54 = vpop.eup %3487 }
 0x45f   : > { %v3490_v46 = vpop.eup %3489  ;;  %v2262_v52 = vpack.c.bf16 %v3488_v54, %v3484_v30 }
 0x460   : > { %v2263_v45 = vpack.c.bf16 %v3490_v46, %v3486_v37 }
 0x462   : > { %2487 = vmatprep.mubr.bf16.mxu1 %v2263_v45 }
 0x463   : > { %2488 = vmatmul.mubr.bf16.gmra.mrb[108].mxu1 %v2262_v52 }
 0x4fe   : > { %v2791_v8 = vpop.f32.mrb[64].mxu0 }
 0x4ff   : > { %v2792_v24 = vpop.f32.mrb[65].mxu0 }
 0x500   : > { %v2793_v49 = vadd.f32 %v2792_v24, %v2791_v8  ;;  %v2794_v25 = vpop.f32.mrb[66].mxu0 }
 0x501   : > { %v2795_v29 = vpop.f32.mrb[67].mxu0 }
 0x502   : > { %v2434_v31 = vadd.f32 %v2793_v49, %v4253_v57  ;;  %v2796_v32 = vadd.f32 %v2795_v29, %v2794_v25 }
 0x504   : > { %2497 = vst.msk [vmem:[%s4260_s21] sm:$0xff] %vm2496_vm1, %v2434_v31  ;;  %v2437_v34 = vadd.f32 %v2796_v32, %v4253_v57 }
 0x506   : > { %2498 = vst.msk [vmem:[%s4260_s21 + $0x8] sm:$0xff] %vm2496_vm1, %v2437_v34  ;;  %v2797_v36 = vpop.f32.mrb[68].mxu0 }
 0x507   : > { %v2798_v38 = vpop.f32.mrb[69].mxu0 }
 0x508   : > { %v2799_v41 = vadd.f32 %v2798_v38, %v2797_v36  ;;  %v2800_v44 = vpop.f32.mrb[70].mxu0 }
 0x509   : > { %v2801_v50 = vpop.f32.mrb[71].mxu0 }
 0x50a   : > { %v2442_v20 = vadd.f32 %v2799_v41, %v4253_v57  ;;  %v2802_v56 = vadd.f32 %v2801_v50, %v2800_v44 }
 0x50c   : > { %2499 = vst.msk [vmem:[%s4260_s21 + $0x10] sm:$0xff] %vm2496_vm1, %v2442_v20  ;;  %v2445_v59 = vadd.f32 %v2802_v56, %v4253_v57 }
 0x50e   : > { %2500 = vst.msk [vmem:[%s4260_s21 + $0x18] sm:$0xff] %vm2496_vm1, %v2445_v59  ;;  %v2803_v61 = vpop.f32.mrb[72].mxu0 }
 0x50f   : > { %v2804_v9 = vpop.f32.mrb[73].mxu0 }
 0x510   : > { %v2805_v23 = vadd.f32 %v2804_v9, %v2803_v61  ;;  %v2806_v2 = vpop.f32.mrb[74].mxu0 }
 0x511   : > { %v2807_v3 = vpop.f32.mrb[75].mxu0 }
 0x512   : > { %v2450_v5 = vadd.f32 %v2805_v23, %v4253_v57  ;;  %v2808_v7 = vadd.f32 %v2807_v3, %v2806_v2 }
 0x514   : > { %2501 = vst.msk [vmem:[%s4260_s21 + $0x20] sm:$0xff] %vm2496_vm1, %v2450_v5  ;;  %v2453_v1 = vadd.f32 %v2808_v7, %v4253_v57 }
 0x516   : > { %2502 = vst.msk [vmem:[%s4260_s21 + $0x28] sm:$0xff] %vm2496_vm1, %v2453_v1  ;;  %v2809_v4 = vpop.f32.mrb[76].mxu0 }
 0x517   : > { %v2810_v11 = vpop.f32.mrb[77].mxu0 }
 0x518   : > { %v2811_v12 = vadd.f32 %v2810_v11, %v2809_v4  ;;  %v2812_v13 = vpop.f32.mrb[78].mxu0 }
 0x519   : > { %v2813_v14 = vpop.f32.mrb[79].mxu0 }
 0x51a   : > { %v2458_v16 = vadd.f32 %v2811_v12, %v4253_v57  ;;  %v2814_v19 = vadd.f32 %v2813_v14, %v2812_v13 }
 0x51c   : > { %2503 = vst.msk [vmem:[%s4260_s21 + $0x30] sm:$0xff] %vm2496_vm1, %v2458_v16  ;;  %v2461_v22 = vadd.f32 %v2814_v19, %v4253_v57 }
 0x51e   : > { %2504 = vst.msk [vmem:[%s4260_s21 + $0x38] sm:$0xff] %vm2496_vm1, %v2461_v22  ;;  %v2815_v21 = vpop.f32.mrb[96].mxu1 }
 0x51f   : > { %v2816_v28 = vpop.f32.mrb[97].mxu1 }
 0x520   : > { %v2817_v33 = vadd.f32 %v2816_v28, %v2815_v21  ;;  %v2818_v39 = vpop.f32.mrb[98].mxu1 }
 0x521   : > { %v2819_v42 = vpop.f32.mrb[99].mxu1 }
 0x522   : > { %v2466_v47 = vadd.f32 %v2817_v33, %v4253_v57  ;;  %v2820_v58 = vadd.f32 %v2819_v42, %v2818_v39 }
 0x524   : > { %2505 = vst.msk [vmem:[%s4260_s21 + $0x40] sm:$0xff] %vm2496_vm1, %v2466_v47  ;;  %v2469_v0 = vadd.f32 %v2820_v58, %v4253_v57 }
 0x526   : > { %2506 = vst.msk [vmem:[%s4260_s21 + $0x48] sm:$0xff] %vm2496_vm1, %v2469_v0  ;;  %v2821_v6 = vpop.f32.mrb[100].mxu1 }
 0x527   : > { %v2822_v15 = vpop.f32.mrb[101].mxu1 }
 0x528   : > { %v2823_v40 = vadd.f32 %v2822_v15, %v2821_v6  ;;  %v2824_v48 = vpop.f32.mrb[102].mxu1 }
 0x529   : > { %v2825_v53 = vpop.f32.mrb[103].mxu1 }
 0x52a   : > { %v2474_v60 = vadd.f32 %v2823_v40, %v4253_v57  ;;  %v2826_v63 = vadd.f32 %v2825_v53, %v2824_v48 }
 0x52c   : > { %2507 = vst.msk [vmem:[%s4260_s21 + $0x50] sm:$0xff] %vm2496_vm1, %v2474_v60  ;;  %v2477_v10 = vadd.f32 %v2826_v63, %v4253_v57 }
 0x52e   : > { %2508 = vst.msk [vmem:[%s4260_s21 + $0x58] sm:$0xff] %vm2496_vm1, %v2477_v10  ;;  %v2827_v27 = vpop.f32.mrb[104].mxu1 }
 0x52f   : > { %v2828_v35 = vpop.f32.mrb[105].mxu1 }
 0x530   : > { %v2829_v43 = vadd.f32 %v2828_v35, %v2827_v27  ;;  %v2830_v18 = vpop.f32.mrb[106].mxu1 }
 0x531   : > { %v2831_v51 = vpop.f32.mrb[107].mxu1 }
 0x532   : > { %v2482_v55 = vadd.f32 %v2829_v43, %v4253_v57  ;;  %v2832_v62 = vadd.f32 %v2831_v51, %v2830_v18 }
 0x534   : > { %2509 = vst.msk [vmem:[%s4260_s21 + $0x60] sm:$0xff] %vm2496_vm1, %v2482_v55  ;;  %v2485_v26 = vadd.f32 %v2832_v62, %v4253_v57 }
 0x536   : > { %2510 = vst.msk [vmem:[%s4260_s21 + $0x68] sm:$0xff] %vm2496_vm1, %v2485_v26  ;;  %v2833_v17 = vpop.f32.mrb[108].mxu1 }
 0x537   : > { %v2834_v30 = vpop.f32.mrb[109].mxu1 }
 0x538   : > { %v2835_v37 = vadd.f32 %v2834_v30, %v2833_v17  ;;  %v2836_v54 = vpop.f32.mrb[110].mxu1 }
 0x539   : > { %v2837_v46 = vpop.f32.mrb[111].mxu1 }
 0x53a   : > { %v2490_v52 = vadd.f32 %v2835_v37, %v4253_v57  ;;  %v2838_v45 = vadd.f32 %v2837_v46, %v2836_v54 }
 0x53c   : > { %2511 = vst.msk [vmem:[%s4260_s21 + $0x70] sm:$0xff] %vm2496_vm1, %v2490_v52  ;;  %v2493_v8 = vadd.f32 %v2838_v45, %v4253_v57 }
 0x53e   : > { %2512 = vst.msk [vmem:[%s4260_s21 + $0x78] sm:$0xff] %vm2496_vm1, %v2493_v8 }
 0x53f PF: > { %s25_s19 = sadd.s32 1, %s3561_s19  }
 0x540   : > { %p22_p7 = scmp.ge.s32.totalorder %s25_s19, 4  }
 0x542   :  { %24 = sbr.rel (!%p22_p7) target bundleno = 5 (0x5), region = 103 }
 0x549   :  { %2535 = vsyncpa [#allocation4], 1 }
 0x54a   :  { %2537 = vsyncpa [#allocation4 + $0x1], 1 }
 0x54b   :  { %2538 = vsyncpa [#allocation6], 1 }

</bundles_post_ra>
